<compile_context>
chip_gen: v5e
topology: v5e:2x2
jax: 0.10.0
libtpu: 0.0.40
codegen_flags: <defaults>
</compile_context>

<pallas_src>
import functools

import jax
import jax.numpy as jnp
import numpy as np
from jax.experimental import pallas as pl
from jax.experimental.pallas import tpu as pltpu


# --------------------------------------------------------------------------
# Kernel
# --------------------------------------------------------------------------
def _nvae_cell_kernel(
    # inputs
    dt_ref,                       # SMEM (1,)        f32
    I_ref,                        # VMEM (Bp, TILE)  bf16  image tile
    We1_ref,                      # VMEM (TILE, Hd)  bf16  encoder L1 tile
    Wd2_ref,                      # VMEM (Hd, TILE)  bf16  decoder L2 tile
    bd2_ref,                      # VMEM (1, TILE)   f32
    x1_ref, x2_ref, u_ref,        # VMEM (Bp, dx)    f32
    eps_p_ref, eps_q_ref,         # VMEM (Bp, dx)    f32
    velA_ref, vel_logB_ref, vel_logC_ref, trans_ls_ref,   # (1, dx) f32
    be1_ref,                      # VMEM (1, Hd)     f32
    Wheads_ref,                   # VMEM (Hd, 2*HS)  bf16  fused [mu | logstd]
    bheads_ref,                   # VMEM (1, 2*HS)   f32
    Wd1_ref,                      # VMEM (dx, Hd)    bf16
    bd1_ref,                      # VMEM (1, Hd)     f32
    # outputs
    Irec_ref,                     # VMEM (Bp, TILE)  f32
    state_ref,                    # VMEM (2, Bp, dx) f32   [x_q_t ; v_t]
    scal_ref,                     # VMEM (1, 4)      f32   [E, E_kl, beta_kl, E_ll]
    # scratch
    he_acc,                       # VMEM (Bp, Hd)   f32    encoder pre-activation acc
    hd_ref,                       # VMEM (Bp, Hd)   bf16   decoder hidden (computed once)
    sse_acc,                      # VMEM (Bp, TILE) f32    elementwise SSE accumulator
    pmu_sc,                       # VMEM (Bp, dx)   f32    transition mean stash
    vt_sc,                        # VMEM (Bp, dx)   f32    velocity stash
    *, b_actual,
):
    f32, bf16 = jnp.float32, jnp.bfloat16
    k = pl.program_id(0)
    nk = pl.num_programs(0)

    # ---- grid step 0: velocity/transition (tiny VPU+EUP work, done once),
    #      decoder hidden layer, accumulator init -----------------------------
    @pl.when(k == 0)
    def _init():
        dt = dt_ref[0]                                     # scalar (SMEM path)
        x1, x2, u = x1_ref[...], x2_ref[...], u_ref[...]
        v_tn1 = (x1 - x2) / dt
        v_t = v_tn1 + dt * (velA_ref[...] * x1
                            - jnp.exp(vel_logB_ref[...]) * v_tn1
                            + jnp.exp(vel_logC_ref[...]) * u)
        p_mu = x1 + dt * v_t
        vt_sc[...] = v_t
        pmu_sc[...] = p_mu

        x_p_t = p_mu + jnp.exp(trans_ls_ref[...]) * eps_p_ref[...]        # rsample
        hd_ref[...] = jnp.maximum(
            jnp.dot(x_p_t.astype(bf16), Wd1_ref[...],
                    preferred_element_type=f32) + bd1_ref[...], 0.0).astype(bf16)

        he_acc[...] = jnp.zeros_like(he_acc)
        sse_acc[...] = jnp.zeros_like(sse_acc)

    I_bf = I_ref[...]                                      # (Bp, TILE) bf16

    # ---- encoder layer-1 partial product (reduced over image tiles) ---------
    he_acc[...] += jnp.dot(I_bf, We1_ref[...], preferred_element_type=f32)

    # ---- decoder output tile + elementwise reconstruction error -------------
    I_rec = jnp.dot(hd_ref[...], Wd2_ref[...],
                    preferred_element_type=f32) + bd2_ref[...]
    Irec_ref[...] = I_rec
    diff = I_rec - I_bf.astype(f32)
    sse_acc[...] += diff * diff            # pure VPU; full reduce at finalize

    # ---- finalize: encoder heads, KL, losses, state outputs -----------------
    @pl.when(k == nk - 1)
    def _finalize():
        Bp, dx = x1_ref.shape
        hs = Wheads_ref.shape[1] // 2      # 128-aligned start of log-std head
        inv_B = 1.0 / b_actual

        h_e = jnp.maximum(he_acc[...] + be1_ref[...], 0.0)
        heads = jnp.dot(h_e.astype(bf16), Wheads_ref[...],
                        preferred_element_type=f32) + bheads_ref[...]
        q_mu = heads[:, :dx]
        q_ls = heads[:, hs:hs + dx]
        q_std = jnp.exp(q_ls)
        x_q_t = q_mu + q_std * eps_q_ref[...]                      # rsample

        # KL(q || p_transition) using log-stds directly
        trans_ls = trans_ls_ref[...]
        p_mu = pmu_sc[...]
        dmu = q_mu - p_mu
        half_inv_pvar = 0.5 * jnp.exp(-2.0 * trans_ls)             # 1/(2 p_std^2)
        kl = trans_ls - q_ls + (q_std * q_std + dmu * dmu) * half_inv_pvar - 0.5

        # mask padded batch rows out of the reductions
        row = jax.lax.broadcasted_iota(jnp.int32, (Bp, 1), 0)
        bmask = (row < b_actual).astype(f32)

        E_kl = jnp.sum(kl * bmask, axis=(0, 1), keepdims=True) * inv_B     # (1, 1)
        E_ll = -jnp.sum(sse_acc[...] * bmask, axis=(0, 1), keepdims=True) * inv_B
        beta_kl = E_kl                                             # kl_beta = 1
        E = E_ll - beta_kl                  # regularization=False, decoder_free=False

        state_ref[0] = x_q_t
        state_ref[1] = vt_sc[...]

        # TODO(synk): could move the scalar slab to an SMEM output instead of a
        # masked lane-select VMEM store; negligible either way.
        lane = jax.lax.broadcasted_iota(jnp.int32, (1, 4), 1)
        scal_ref[...] = jnp.where(
            lane == 0, E,
            jnp.where(lane == 1, E_kl, jnp.where(lane == 2, beta_kl, E_ll)))


# --------------------------------------------------------------------------
# VMEM-aware tile sizing
# --------------------------------------------------------------------------
def _round_up(n, m):
    return ((n + m - 1) // m) * m


def _query_vmem_capacity_bytes():
    try:
        return int(pltpu.get_tpu_info().vmem_capacity_bytes)
    except Exception:
        return 64 * 1024 * 1024            # conservative fallback (v7x physical)


def _vmem_need_bytes(tile, hidden, b_pad, head_w, dx):
    """Rough double-buffered working-set estimate (with lane/sublane padding)."""
    lane = lambda n: _round_up(max(n, 1), 128)
    sub = lambda n: _round_up(max(n, 1), 8)
    hid_l, dx_l, t_l = lane(hidden), lane(dx), lane(tile)
    dbuf = 2
    streamed = dbuf * (
        sub(tile) * hid_l * 2          # We1 tile  (bf16)
        + sub(hidden) * t_l * 2        # Wd2 tile  (bf16)
        + sub(b_pad) * t_l * 2         # image tile (bf16)
        + sub(b_pad) * t_l * 4         # I_rec tile (f32, output)
        + 8 * t_l * 4)                 # bd2 tile  (f32)
    resident = dbuf * (
        sub(hidden) * lane(head_w) * 2     # fused heads (bf16)
        + 8 * lane(head_w) * 4             # bheads
        + sub(dx) * hid_l * 2              # Wd1 (bf16)
        + 2 * 8 * hid_l * 4                # be1, bd1
        + 5 * sub(b_pad) * dx_l * 4        # x1,x2,u,eps_p,eps_q
        + 4 * 8 * dx_l * 4)                # velA, logB, logC, trans_logstd
    scratch = (sub(b_pad) * hid_l * 4      # he_acc
               + sub(b_pad) * hid_l * 2    # hd (bf16)
               + sub(b_pad) * t_l * 4      # sse_acc
               + 2 * sub(b_pad) * dx_l * 4)  # pmu, vt
    small_outs = 2 * (2 * sub(b_pad) * dx_l * 4 + 8 * 128 * 4)
    return streamed + resident + scratch + small_outs


def _pick_img_tile(d_pad, hidden, b_pad, head_w, dx, budget_bytes):
    """Largest 128-multiple divisor of d_pad (capped at 2048) fitting the budget."""
    best = 128
    t = 128
    while t <= min(d_pad, 2048):
        if d_pad % t == 0 and _vmem_need_bytes(t, hidden, b_pad, head_w, dx) <= budget_bytes:
            best = t
        t += 128
    return best


# --------------------------------------------------------------------------
# Weight fusion / padding helpers
# --------------------------------------------------------------------------
def _fused_weights(params):
    """bf16 MXU weights + fused (mu | log-std) encoder head.

    The log-std head starts at a 128-lane-aligned column so the kernel splits
    the fused matmul output with aligned lane slices; the fused head width is
    therefore a multiple of 256 (MXU-friendly on v6e/v7x).
    """
    bf16 = jnp.bfloat16
    hidden, dx = params["We_mu"].shape
    hs = max(128, _round_up(dx, 128))
    Wheads = jnp.zeros((hidden, 2 * hs), jnp.float32)
    Wheads = Wheads.at[:, :dx].set(params["We_mu"])
    Wheads = Wheads.at[:, hs:hs + dx].set(params["We_ls"])
    bheads = jnp.zeros((1, 2 * hs), jnp.float32)
    bheads = bheads.at[:, :dx].set(params["be_mu"])
    bheads = bheads.at[:, hs:hs + dx].set(params["be_ls"])
    return {
        "We1": params["We1"].astype(bf16),
        "Wd1": params["Wd1"].astype(bf16),
        "Wd2": params["Wd2"].astype(bf16),
        "Wheads": Wheads.astype(bf16),
        "bheads": bheads,
    }


# --------------------------------------------------------------------------
# Wrapper
# --------------------------------------------------------------------------
def newtonian_vae_cell(params, I_t, x_q_tn1, x_q_tn2, u_tn1, dt, eps_p, eps_q):
    """Fused Pallas forward of NewtonianVAECell. Returns the output dict."""
    B, C, H, W = I_t.shape
    Dimg = C * H * W
    dx = x_q_tn1.shape[-1]
    hidden = params["We1"].shape[1]
    fw = _fused_weights(params)
    head_w = fw["Wheads"].shape[1]

    # Pad batch to a sublane multiple (>=8) and the image dim to a lane multiple.
    Bp = _round_up(max(B, 8), 8)
    Dpad = _round_up(Dimg, 128)

    def pad_batch(a):
        return jnp.pad(a, ((0, Bp - B), (0, 0))) if Bp > B else a

    I_flat = I_t.reshape(B, Dimg).astype(jnp.bfloat16)
    if Dpad > Dimg:
        I_flat = jnp.pad(I_flat, ((0, 0), (0, Dpad - Dimg)))
    I_flat = pad_batch(I_flat)

    We1 = fw["We1"]
    Wd2 = fw["Wd2"]
    bd2 = params["bd2"]
    if Dpad > Dimg:
        We1 = jnp.pad(We1, ((0, Dpad - Dimg), (0, 0)))
        Wd2 = jnp.pad(Wd2, ((0, 0), (0, Dpad - Dimg)))
        bd2 = jnp.pad(bd2, ((0, 0), (0, Dpad - Dimg)))

    x1 = pad_batch(x_q_tn1.astype(jnp.float32))
    x2 = pad_batch(x_q_tn2.astype(jnp.float32))
    u = pad_batch(u_tn1.astype(jnp.float32))
    ep = pad_batch(eps_p.astype(jnp.float32))
    eq = pad_batch(eps_q.astype(jnp.float32))

    # VMEM-aware tile + explicit scoped-VMEM limit.
    vmem_cap = _query_vmem_capacity_bytes()
    TILE = _pick_img_tile(Dpad, hidden, Bp, head_w, dx, int(0.6 * vmem_cap))
    need = _vmem_need_bytes(TILE, hidden, Bp, head_w, dx)
    vmem_limit = int(min(0.9 * vmem_cap, max(1.4 * need, 32 * 1024 * 1024)))
    grid = (Dpad // TILE,)

    dt_arr = jnp.asarray(dt, jnp.float32).reshape(1)

    def resident(shape):       # fetched once (constant block index), stays in VMEM
        return pl.BlockSpec(shape, lambda k: (0,) * len(shape))

    inputs = (
        dt_arr, I_flat, We1, Wd2, bd2,
        x1, x2, u, ep, eq,
        params["vel_A"], params["vel_logB"], params["vel_logC"],
        params["trans_logstd"],
        params["be1"], fw["Wheads"], fw["bheads"], fw["Wd1"], params["bd1"],
    )
    in_specs = [
        pl.BlockSpec(memory_space=pltpu.MemorySpace.SMEM),        # dt (scalar)
        pl.BlockSpec((Bp, TILE), lambda k: (0, k)),               # image tile (bf16)
        pl.BlockSpec((TILE, hidden), lambda k: (k, 0)),           # We1 tile
        pl.BlockSpec((hidden, TILE), lambda k: (0, k)),           # Wd2 tile
        pl.BlockSpec((1, TILE), lambda k: (0, k)),                # bd2 tile
        resident((Bp, dx)), resident((Bp, dx)), resident((Bp, dx)),
        resident((Bp, dx)), resident((Bp, dx)),
        resident((1, dx)), resident((1, dx)), resident((1, dx)),
        resident((1, dx)),
        resident((1, hidden)), resident((hidden, head_w)),
        resident((1, head_w)), resident((dx, hidden)), resident((1, hidden)),
    ]
    out_shape = (
        jax.ShapeDtypeStruct((Bp, Dpad), jnp.float32),            # I_t_rec (flat, padded)
        jax.ShapeDtypeStruct((2, Bp, dx), jnp.float32),           # [x_q_t ; v_t]
        jax.ShapeDtypeStruct((1, 4), jnp.float32),                # [E, E_kl, beta_kl, E_ll]
    )
    out_specs = (
        pl.BlockSpec((Bp, TILE), lambda k: (0, k)),
        pl.BlockSpec((2, Bp, dx), lambda k: (0, 0, 0)),
        pl.BlockSpec((1, 4), lambda k: (0, 0)),
    )

    kernel = functools.partial(_nvae_cell_kernel, b_actual=B)

    I_rec_flat, state, scalars = pl.pallas_call(
        kernel,
        out_shape=out_shape,
        grid=grid,
        in_specs=in_specs,
        out_specs=out_specs,
        scratch_shapes=[
            pltpu.VMEM((Bp, hidden), jnp.float32),    # encoder pre-activation acc
            pltpu.VMEM((Bp, hidden), jnp.bfloat16),   # decoder hidden (bf16)
            pltpu.VMEM((Bp, TILE), jnp.float32),      # elementwise SSE accumulator
            pltpu.VMEM((Bp, dx), jnp.float32),        # p_mu stash
            pltpu.VMEM((Bp, dx), jnp.float32),        # v_t stash
        ],
        compiler_params=pltpu.CompilerParams(
            # Image-tile axis carries reductions (h_e, SSE) -> "arbitrary".
            # TODO(synk): add a leading "parallel" axis (batch / stream split)
            # to engage v7x's second TensorCore.
            dimension_semantics=("arbitrary",),
            vmem_limit_bytes=vmem_limit),
    )(*inputs)

    x_q_t = state[0, :B]
    v_t = state[1, :B]
    E, E_kl, beta_kl, E_ll = (scalars[0, i] for i in range(4))
    return {
        "E": E,
        "x_q_t": x_q_t,
        "v_t": jax.lax.stop_gradient(v_t),          # mirrors v_t.detach()
        "E_kl": E_kl,                               # torch returns .item(); 0-d array here
        "beta_kl": jax.lax.stop_gradient(beta_kl),
        "E_ll": E_ll,
        "I_t_rec": I_rec_flat[:B, :Dimg].reshape(B, C, H, W),
    }


# --------------------------------------------------------------------------
# Pure-JAX reference (identical bf16 image / matmul semantics) for validation
# --------------------------------------------------------------------------
def reference_forward(params, I_t, x1, x2, u, dt, eps_p, eps_q):
    f32, bf16 = jnp.float32, jnp.bfloat16
    fw = _fused_weights(params)
    hs = fw["Wheads"].shape[1] // 2
    B = I_t.shape[0]
    dx = x1.shape[-1]
    I_bf = I_t.reshape(B, -1).astype(bf16)          # image streamed in bf16
    I32 = I_bf.astype(f32)

    v_tn1 = (x1 - x2) / dt
    v_t = v_tn1 + dt * (params["vel_A"] * x1
                        - jnp.exp(params["vel_logB"]) * v_tn1
                        + jnp.exp(params["vel_logC"]) * u)
    p_mu = x1 + dt * v_t
    p_std = jnp.exp(params["trans_logstd"])
    x_p_t = p_mu + p_std * eps_p

    h_d = jnp.maximum(
        jnp.dot(x_p_t.astype(bf16), fw["Wd1"], preferred_element_type=f32)
        + params["bd1"], 0.0)
    I_rec = jnp.dot(h_d.astype(bf16), fw["Wd2"],
                    preferred_element_type=f32) + params["bd2"]
    E_ll = -jnp.sum((I_rec - I32) ** 2) / B

    h_e = jnp.maximum(
        jnp.dot(I_bf, fw["We1"], preferred_element_type=f32)
        + params["be1"], 0.0)
    heads = jnp.dot(h_e.astype(bf16), fw["Wheads"],
                    preferred_element_type=f32) + fw["bheads"]
    q_mu, q_ls = heads[:, :dx], heads[:, hs:hs + dx]
    q_std = jnp.exp(q_ls)
    x_q_t = q_mu + q_std * eps_q

    kl = (params["trans_logstd"] - q_ls
          + (q_std ** 2 + (q_mu - p_mu) ** 2)
          * (0.5 * jnp.exp(-2.0 * params["trans_logstd"])) - 0.5)
    E_kl = jnp.sum(kl) / B
    return {"E": E_ll - E_kl, "x_q_t": x_q_t, "v_t": v_t, "E_kl": E_kl,
            "beta_kl": E_kl, "E_ll": E_ll, "I_t_rec": I_rec.reshape(I_t.shape)}


def init_params(key, dim_x, hidden, d_img):
    ks = jax.random.split(key, 10)

    def lin(k, fi, fo):
        return jax.random.normal(k, (fi, fo), jnp.float32) / np.sqrt(fi)

    return {
        "vel_A":        0.1 * jax.random.normal(ks[0], (1, dim_x), jnp.float32),
        "vel_logB":     0.1 * jax.random.normal(ks[1], (1, dim_x), jnp.float32),
        "vel_logC":     0.1 * jax.random.normal(ks[2], (1, dim_x), jnp.float32),
        "trans_logstd": jnp.full((1, dim_x), -1.0, jnp.float32),
        "We1":   lin(ks[3], d_img, hidden),
        "be1":   jnp.zeros((1, hidden), jnp.float32),
        "We_mu": lin(ks[4], hidden, dim_x),
        "be_mu": jnp.zeros((1, dim_x), jnp.float32),
        "We_ls": 0.1 * lin(ks[5], hidden, dim_x),
        "be_ls": jnp.zeros((1, dim_x), jnp.float32),
        "Wd1":   lin(ks[6], dim_x, hidden),
        "bd1":   jnp.zeros((1, hidden), jnp.float32),
        "Wd2":   lin(ks[7], hidden, d_img),
        "bd2":   jnp.zeros((1, d_img), jnp.float32),
    }


if __name__ == "__main__":
    B, C, H, W = 2, 4, 16, 16
    dim_x, hidden = 4, 32
    d_img = C * H * W
    dt = 0.1

    key = jax.random.PRNGKey(0)
    kp, k1, k2, k3, k4, k5, k6 = jax.random.split(key, 7)

    params = init_params(kp, dim_x, hidden, d_img)
    I_t     = jax.random.normal(k1, (B, C, H, W), jnp.float32)   # NCHW
    x_q_tn1 = jax.random.normal(k2, (B, dim_x), jnp.float32)
    x_q_tn2 = jax.random.normal(k3, (B, dim_x), jnp.float32)
    u_tn1   = jax.random.normal(k4, (B, dim_x), jnp.float32)
    eps_p   = jax.random.normal(k5, (B, dim_x), jnp.float32)     # transition rsample noise
    eps_q   = jax.random.normal(k6, (B, dim_x), jnp.float32)     # encoder rsample noise

    out = newtonian_vae_cell(params, I_t, x_q_tn1, x_q_tn2, u_tn1, dt, eps_p, eps_q)
    out = jax.block_until_ready(out)

    ref = reference_forward(params, I_t, x_q_tn1, x_q_tn2, u_tn1, dt, eps_p, eps_q)
    for name in ("E", "E_kl", "E_ll", "x_q_t", "v_t", "I_t_rec"):
        np.testing.assert_allclose(np.asarray(out[name]), np.asarray(ref[name]),
                                   rtol=2e-2, atol=2e-2)

    print("KERNEL_OK")
</pallas_src>

<mosaic_0001>
module attributes {stable_mosaic.version = 11 : i64} {
  func.func @_nvae_cell_kernel(%arg0: i32, %arg1: memref<1xf32, #tpu.memory_space<smem>>, %arg2: memref<8x1024xbf16, #tpu.memory_space<vmem>>, %arg3: memref<1024x32xbf16, #tpu.memory_space<vmem>>, %arg4: memref<32x1024xbf16, #tpu.memory_space<vmem>>, %arg5: memref<1x1024xf32, #tpu.memory_space<vmem>>, %arg6: memref<8x4xf32, #tpu.memory_space<vmem>>, %arg7: memref<8x4xf32, #tpu.memory_space<vmem>>, %arg8: memref<8x4xf32, #tpu.memory_space<vmem>>, %arg9: memref<8x4xf32, #tpu.memory_space<vmem>>, %arg10: memref<8x4xf32, #tpu.memory_space<vmem>>, %arg11: memref<1x4xf32, #tpu.memory_space<vmem>>, %arg12: memref<1x4xf32, #tpu.memory_space<vmem>>, %arg13: memref<1x4xf32, #tpu.memory_space<vmem>>, %arg14: memref<1x4xf32, #tpu.memory_space<vmem>>, %arg15: memref<1x32xf32, #tpu.memory_space<vmem>>, %arg16: memref<32x256xbf16, #tpu.memory_space<vmem>>, %arg17: memref<1x256xf32, #tpu.memory_space<vmem>>, %arg18: memref<4x32xbf16, #tpu.memory_space<vmem>>, %arg19: memref<1x32xf32, #tpu.memory_space<vmem>>, %arg20: memref<8x1024xf32, #tpu.memory_space<vmem>>, %arg21: memref<2x8x4xf32, #tpu.memory_space<vmem>>, %arg22: memref<1x4xf32, #tpu.memory_space<vmem>>, %arg23: memref<8x32xf32, #tpu.memory_space<vmem>>, %arg24: memref<8x32xbf16, #tpu.memory_space<vmem>>, %arg25: memref<8x1024xf32, #tpu.memory_space<vmem>>, %arg26: memref<8x4xf32, #tpu.memory_space<vmem>>, %arg27: memref<8x4xf32, #tpu.memory_space<vmem>>) attributes {dimension_semantics = [#tpu.dimension_semantics<arbitrary>], iteration_bounds = array<i64: 1>, scalar_prefetch = 0 : i64, scratch_operands = 5 : i64, tpu.core_type = #tpu.core_type<tc>, window_params = [{transform_indices = @transform_0, window_bounds = array<i64: 1>}, {transform_indices = @transform_1, window_bounds = array<i64: 8, 1024>}, {transform_indices = @transform_2, window_bounds = array<i64: 1024, 32>}, {transform_indices = @transform_3, window_bounds = array<i64: 32, 1024>}, {transform_indices = @transform_4, window_bounds = array<i64: 1, 1024>}, {pipeline_mode = #tpu.pipeline_mode<synchronous>, transform_indices = @transform_5, window_bounds = array<i64: 8, 4>}, {pipeline_mode = #tpu.pipeline_mode<synchronous>, transform_indices = @transform_6, window_bounds = array<i64: 8, 4>}, {pipeline_mode = #tpu.pipeline_mode<synchronous>, transform_indices = @transform_7, window_bounds = array<i64: 8, 4>}, {pipeline_mode = #tpu.pipeline_mode<synchronous>, transform_indices = @transform_8, window_bounds = array<i64: 8, 4>}, {pipeline_mode = #tpu.pipeline_mode<synchronous>, transform_indices = @transform_9, window_bounds = array<i64: 8, 4>}, {pipeline_mode = #tpu.pipeline_mode<synchronous>, transform_indices = @transform_10, window_bounds = array<i64: 1, 4>}, {pipeline_mode = #tpu.pipeline_mode<synchronous>, transform_indices = @transform_11, window_bounds = array<i64: 1, 4>}, {pipeline_mode = #tpu.pipeline_mode<synchronous>, transform_indices = @transform_12, window_bounds = array<i64: 1, 4>}, {pipeline_mode = #tpu.pipeline_mode<synchronous>, transform_indices = @transform_13, window_bounds = array<i64: 1, 4>}, {pipeline_mode = #tpu.pipeline_mode<synchronous>, transform_indices = @transform_14, window_bounds = array<i64: 1, 32>}, {pipeline_mode = #tpu.pipeline_mode<synchronous>, transform_indices = @transform_15, window_bounds = array<i64: 32, 256>}, {pipeline_mode = #tpu.pipeline_mode<synchronous>, transform_indices = @transform_16, window_bounds = array<i64: 1, 256>}, {pipeline_mode = #tpu.pipeline_mode<synchronous>, transform_indices = @transform_17, window_bounds = array<i64: 4, 32>}, {pipeline_mode = #tpu.pipeline_mode<synchronous>, transform_indices = @transform_18, window_bounds = array<i64: 1, 32>}, {transform_indices = @transform_19, window_bounds = array<i64: 8, 1024>}, {pipeline_mode = #tpu.pipeline_mode<synchronous>, transform_indices = @transform_20, window_bounds = array<i64: 2, 8, 4>}, {pipeline_mode = #tpu.pipeline_mode<synchronous>, transform_indices = @transform_21, window_bounds = array<i64: 1, 4>}]} {
    %c0_i32 = arith.constant 0 : i32
    %0 = arith.cmpi eq, %arg0, %c0_i32 : i32
    %1 = arith.extui %0 : i1 to i32
    %c0_i32_0 = arith.constant 0 : i32
    %2 = arith.cmpi ne, %1, %c0_i32_0 : i32
    scf.if %2 {
      %c0_23 = arith.constant 0 : index
      %25 = memref.load %arg1[%c0_23] : memref<1xf32, #tpu.memory_space<smem>>
      %c0_24 = arith.constant 0 : index
      %c0_25 = arith.constant 0 : index
      %26 = vector.load %arg6[%c0_24, %c0_25] : memref<8x4xf32, #tpu.memory_space<vmem>>, vector<8x4xf32>
      %c0_26 = arith.constant 0 : index
      %c0_27 = arith.constant 0 : index
      %27 = vector.load %arg7[%c0_26, %c0_27] : memref<8x4xf32, #tpu.memory_space<vmem>>, vector<8x4xf32>
      %c0_28 = arith.constant 0 : index
      %c0_29 = arith.constant 0 : index
      %28 = vector.load %arg8[%c0_28, %c0_29] : memref<8x4xf32, #tpu.memory_space<vmem>>, vector<8x4xf32>
      %29 = arith.subf %26, %27 : vector<8x4xf32>
      %30 = vector.broadcast %25 : f32 to vector<8x4xf32>
      %31 = arith.divf %29, %30 : vector<8x4xf32>
      %c0_30 = arith.constant 0 : index
      %c0_31 = arith.constant 0 : index
      %32 = vector.load %arg11[%c0_30, %c0_31] : memref<1x4xf32, #tpu.memory_space<vmem>>, vector<1x4xf32>
      %33 = vector.broadcast %32 : vector<1x4xf32> to vector<8x4xf32>
      %34 = arith.mulf %33, %26 : vector<8x4xf32>
      %c0_32 = arith.constant 0 : index
      %c0_33 = arith.constant 0 : index
      %35 = vector.load %arg12[%c0_32, %c0_33] : memref<1x4xf32, #tpu.memory_space<vmem>>, vector<1x4xf32>
      %36 = math.exp %35 : vector<1x4xf32>
      %37 = vector.broadcast %36 : vector<1x4xf32> to vector<8x4xf32>
      %38 = arith.mulf %37, %31 : vector<8x4xf32>
      %39 = arith.subf %34, %38 : vector<8x4xf32>
      %c0_34 = arith.constant 0 : index
      %c0_35 = arith.constant 0 : index
      %40 = vector.load %arg13[%c0_34, %c0_35] : memref<1x4xf32, #tpu.memory_space<vmem>>, vector<1x4xf32>
      %41 = math.exp %40 : vector<1x4xf32>
      %42 = vector.broadcast %41 : vector<1x4xf32> to vector<8x4xf32>
      %43 = arith.mulf %42, %28 : vector<8x4xf32>
      %44 = arith.addf %39, %43 : vector<8x4xf32>
      %45 = vector.broadcast %25 : f32 to vector<8x4xf32>
      %46 = arith.mulf %45, %44 : vector<8x4xf32>
      %47 = arith.addf %31, %46 : vector<8x4xf32>
      %48 = vector.broadcast %25 : f32 to vector<8x4xf32>
      %49 = arith.mulf %48, %47 : vector<8x4xf32>
      %50 = arith.addf %26, %49 : vector<8x4xf32>
      %c0_36 = arith.constant 0 : index
      %c0_37 = arith.constant 0 : index
      %51 = vector.load %arg27[%c0_36, %c0_37] : memref<8x4xf32, #tpu.memory_space<vmem>>, vector<8x4xf32>
      tpu.vector_store %arg27[%c0_36, %c0_37], %47 {strides = array<i32>} : memref<8x4xf32, #tpu.memory_space<vmem>>, vector<8x4xf32>,
      %c0_38 = arith.constant 0 : index
      %c0_39 = arith.constant 0 : index
      %52 = vector.load %arg26[%c0_38, %c0_39] : memref<8x4xf32, #tpu.memory_space<vmem>>, vector<8x4xf32>
      tpu.vector_store %arg26[%c0_38, %c0_39], %50 {strides = array<i32>} : memref<8x4xf32, #tpu.memory_space<vmem>>, vector<8x4xf32>,
      %c0_40 = arith.constant 0 : index
      %c0_41 = arith.constant 0 : index
      %53 = vector.load %arg14[%c0_40, %c0_41] : memref<1x4xf32, #tpu.memory_space<vmem>>, vector<1x4xf32>
      %54 = math.exp %53 : vector<1x4xf32>
      %c0_42 = arith.constant 0 : index
      %c0_43 = arith.constant 0 : index
      %55 = vector.load %arg9[%c0_42, %c0_43] : memref<8x4xf32, #tpu.memory_space<vmem>>, vector<8x4xf32>
      %56 = vector.broadcast %54 : vector<1x4xf32> to vector<8x4xf32>
      %57 = arith.mulf %56, %55 : vector<8x4xf32>
      %58 = arith.addf %50, %57 : vector<8x4xf32>
      %59 = arith.truncf %58 : vector<8x4xf32> to vector<8x4xbf16>
      %c0_44 = arith.constant 0 : index
      %c0_45 = arith.constant 0 : index
      %60 = vector.load %arg18[%c0_44, %c0_45] : memref<4x32xbf16, #tpu.memory_space<vmem>>, vector<4x32xbf16>
      %cst_46 = arith.constant dense<0.000000e+00> : vector<8x32xf32>
      %61 = tpu.matmul %59, %60, %cst_46 {dimension_numbers = #tpu.dot_dimension_numbers<[1], [0], [0], [1], [0, 0, 1, 1], [], []>} : vector<8x4xbf16>, vector<4x32xbf16>, vector<8x32xf32> -> vector<8x32xf32>
      %c0_47 = arith.constant 0 : index
      %c0_48 = arith.constant 0 : index
      %62 = vector.load %arg19[%c0_47, %c0_48] : memref<1x32xf32, #tpu.memory_space<vmem>>, vector<1x32xf32>
      %63 = vector.broadcast %62 : vector<1x32xf32> to vector<8x32xf32>
      %64 = arith.addf %61, %63 : vector<8x32xf32>
      %cst_49 = arith.constant 0.000000e+00 : f32
      %65 = vector.broadcast %cst_49 : f32 to vector<8x32xf32>
      %66 = arith.maximumf %64, %65 : vector<8x32xf32>
      %67 = arith.truncf %66 : vector<8x32xf32> to vector<8x32xbf16>
      %c0_50 = arith.constant 0 : index
      %c0_51 = arith.constant 0 : index
      %68 = vector.load %arg24[%c0_50, %c0_51] : memref<8x32xbf16, #tpu.memory_space<vmem>>, vector<8x32xbf16>
      tpu.vector_store %arg24[%c0_50, %c0_51], %67 {strides = array<i32>} : memref<8x32xbf16, #tpu.memory_space<vmem>>, vector<8x32xbf16>,
      %cst_52 = arith.constant 0.000000e+00 : f32
      %69 = vector.broadcast %cst_52 : f32 to vector<8x32xf32>
      %c0_53 = arith.constant 0 : index
      %c0_54 = arith.constant 0 : index
      %70 = vector.load %arg23[%c0_53, %c0_54] : memref<8x32xf32, #tpu.memory_space<vmem>>, vector<8x32xf32>
      tpu.vector_store %arg23[%c0_53, %c0_54], %69 {strides = array<i32>} : memref<8x32xf32, #tpu.memory_space<vmem>>, vector<8x32xf32>,
      %cst_55 = arith.constant 0.000000e+00 : f32
      %71 = vector.broadcast %cst_55 : f32 to vector<8x1024xf32>
      %c0_56 = arith.constant 0 : index
      %c0_57 = arith.constant 0 : index
      %72 = vector.load %arg25[%c0_56, %c0_57] : memref<8x1024xf32, #tpu.memory_space<vmem>>, vector<8x1024xf32>
      tpu.vector_store %arg25[%c0_56, %c0_57], %71 {strides = array<i32>} : memref<8x1024xf32, #tpu.memory_space<vmem>>, vector<8x1024xf32>,
    } else {
    }
    %c0 = arith.constant 0 : index
    %c0_1 = arith.constant 0 : index
    %3 = vector.load %arg2[%c0, %c0_1] : memref<8x1024xbf16, #tpu.memory_space<vmem>>, vector<8x1024xbf16>
    %c0_2 = arith.constant 0 : index
    %c0_3 = arith.constant 0 : index
    %4 = vector.load %arg23[%c0_2, %c0_3] : memref<8x32xf32, #tpu.memory_space<vmem>>, vector<8x32xf32>
    %c0_4 = arith.constant 0 : index
    %c0_5 = arith.constant 0 : index
    %5 = vector.load %arg3[%c0_4, %c0_5] : memref<1024x32xbf16, #tpu.memory_space<vmem>>, vector<1024x32xbf16>
    %cst = arith.constant dense<0.000000e+00> : vector<8x32xf32>
    %6 = tpu.matmul %3, %5, %cst {dimension_numbers = #tpu.dot_dimension_numbers<[1], [0], [0], [1], [0, 0, 1, 1], [], []>} : vector<8x1024xbf16>, vector<1024x32xbf16>, vector<8x32xf32> -> vector<8x32xf32>
    %7 = arith.addf %4, %6 : vector<8x32xf32>
    %c0_6 = arith.constant 0 : index
    %c0_7 = arith.constant 0 : index
    %8 = vector.load %arg23[%c0_6, %c0_7] : memref<8x32xf32, #tpu.memory_space<vmem>>, vector<8x32xf32>
    tpu.vector_store %arg23[%c0_6, %c0_7], %7 {strides = array<i32>} : memref<8x32xf32, #tpu.memory_space<vmem>>, vector<8x32xf32>,
    %c0_8 = arith.constant 0 : index
    %c0_9 = arith.constant 0 : index
    %9 = vector.load %arg24[%c0_8, %c0_9] : memref<8x32xbf16, #tpu.memory_space<vmem>>, vector<8x32xbf16>
    %c0_10 = arith.constant 0 : index
    %c0_11 = arith.constant 0 : index
    %10 = vector.load %arg4[%c0_10, %c0_11] : memref<32x1024xbf16, #tpu.memory_space<vmem>>, vector<32x1024xbf16>
    %cst_12 = arith.constant dense<0.000000e+00> : vector<8x1024xf32>
    %11 = tpu.matmul %9, %10, %cst_12 {dimension_numbers = #tpu.dot_dimension_numbers<[1], [0], [0], [1], [0, 0, 1, 1], [], []>} : vector<8x32xbf16>, vector<32x1024xbf16>, vector<8x1024xf32> -> vector<8x1024xf32>
    %c0_13 = arith.constant 0 : index
    %c0_14 = arith.constant 0 : index
    %12 = vector.load %arg5[%c0_13, %c0_14] : memref<1x1024xf32, #tpu.memory_space<vmem>>, vector<1x1024xf32>
    %13 = vector.broadcast %12 : vector<1x1024xf32> to vector<8x1024xf32>
    %14 = arith.addf %11, %13 : vector<8x1024xf32>
    %c0_15 = arith.constant 0 : index
    %c0_16 = arith.constant 0 : index
    %15 = vector.load %arg20[%c0_15, %c0_16] : memref<8x1024xf32, #tpu.memory_space<vmem>>, vector<8x1024xf32>
    tpu.vector_store %arg20[%c0_15, %c0_16], %14 {strides = array<i32>} : memref<8x1024xf32, #tpu.memory_space<vmem>>, vector<8x1024xf32>,
    %16 = arith.extf %3 : vector<8x1024xbf16> to vector<8x1024xf32>
    %17 = arith.subf %14, %16 : vector<8x1024xf32>
    %c0_17 = arith.constant 0 : index
    %c0_18 = arith.constant 0 : index
    %18 = vector.load %arg25[%c0_17, %c0_18] : memref<8x1024xf32, #tpu.memory_space<vmem>>, vector<8x1024xf32>
    %19 = arith.mulf %17, %17 : vector<8x1024xf32>
    %20 = arith.addf %18, %19 : vector<8x1024xf32>
    %c0_19 = arith.constant 0 : index
    %c0_20 = arith.constant 0 : index
    %21 = vector.load %arg25[%c0_19, %c0_20] : memref<8x1024xf32, #tpu.memory_space<vmem>>, vector<8x1024xf32>
    tpu.vector_store %arg25[%c0_19, %c0_20], %20 {strides = array<i32>} : memref<8x1024xf32, #tpu.memory_space<vmem>>, vector<8x1024xf32>,
    %c0_i32_21 = arith.constant 0 : i32
    %22 = arith.cmpi eq, %arg0, %c0_i32_21 : i32
    %23 = arith.extui %22 : i1 to i32
    %c0_i32_22 = arith.constant 0 : i32
    %24 = arith.cmpi ne, %23, %c0_i32_22 : i32
    scf.if %24 {
      %c0_23 = arith.constant 0 : index
      %c0_24 = arith.constant 0 : index
      %25 = vector.load %arg23[%c0_23, %c0_24] : memref<8x32xf32, #tpu.memory_space<vmem>>, vector<8x32xf32>
      %c0_25 = arith.constant 0 : index
      %c0_26 = arith.constant 0 : index
      %26 = vector.load %arg15[%c0_25, %c0_26] : memref<1x32xf32, #tpu.memory_space<vmem>>, vector<1x32xf32>
      %27 = vector.broadcast %26 : vector<1x32xf32> to vector<8x32xf32>
      %28 = arith.addf %25, %27 : vector<8x32xf32>
      %cst_27 = arith.constant 0.000000e+00 : f32
      %29 = vector.broadcast %cst_27 : f32 to vector<8x32xf32>
      %30 = arith.maximumf %28, %29 : vector<8x32xf32>
      %31 = arith.truncf %30 : vector<8x32xf32> to vector<8x32xbf16>
      %c0_28 = arith.constant 0 : index
      %c0_29 = arith.constant 0 : index
      %32 = vector.load %arg16[%c0_28, %c0_29] : memref<32x256xbf16, #tpu.memory_space<vmem>>, vector<32x256xbf16>
      %cst_30 = arith.constant dense<0.000000e+00> : vector<8x256xf32>
      %33 = tpu.matmul %31, %32, %cst_30 {dimension_numbers = #tpu.dot_dimension_numbers<[1], [0], [0], [1], [0, 0, 1, 1], [], []>} : vector<8x32xbf16>, vector<32x256xbf16>, vector<8x256xf32> -> vector<8x256xf32>
      %c0_31 = arith.constant 0 : index
      %c0_32 = arith.constant 0 : index
      %34 = vector.load %arg17[%c0_31, %c0_32] : memref<1x256xf32, #tpu.memory_space<vmem>>, vector<1x256xf32>
      %35 = vector.broadcast %34 : vector<1x256xf32> to vector<8x256xf32>
      %36 = arith.addf %33, %35 : vector<8x256xf32>
      %37 = vector.extract_strided_slice %36 {offsets = [0, 0], sizes = [8, 4], strides = [1, 1]} : vector<8x256xf32> to vector<8x4xf32>
      %38 = vector.extract_strided_slice %36 {offsets = [0, 128], sizes = [8, 4], strides = [1, 1]} : vector<8x256xf32> to vector<8x4xf32>
      %39 = math.exp %38 : vector<8x4xf32>
      %c0_33 = arith.constant 0 : index
      %c0_34 = arith.constant 0 : index
      %40 = vector.load %arg10[%c0_33, %c0_34] : memref<8x4xf32, #tpu.memory_space<vmem>>, vector<8x4xf32>
      %41 = arith.mulf %39, %40 : vector<8x4xf32>
      %42 = arith.addf %37, %41 : vector<8x4xf32>
      %c0_35 = arith.constant 0 : index
      %c0_36 = arith.constant 0 : index
      %43 = vector.load %arg14[%c0_35, %c0_36] : memref<1x4xf32, #tpu.memory_space<vmem>>, vector<1x4xf32>
      %c0_37 = arith.constant 0 : index
      %c0_38 = arith.constant 0 : index
      %44 = vector.load %arg26[%c0_37, %c0_38] : memref<8x4xf32, #tpu.memory_space<vmem>>, vector<8x4xf32>
      %45 = arith.subf %37, %44 : vector<8x4xf32>
      %cst_39 = arith.constant -2.000000e+00 : f32
      %46 = vector.broadcast %cst_39 : f32 to vector<1x4xf32>
      %47 = arith.mulf %46, %43 : vector<1x4xf32>
      %48 = math.exp %47 : vector<1x4xf32>
      %cst_40 = arith.constant 5.000000e-01 : f32
      %49 = vector.broadcast %cst_40 : f32 to vector<1x4xf32>
      %50 = arith.mulf %49, %48 : vector<1x4xf32>
      %51 = vector.broadcast %43 : vector<1x4xf32> to vector<8x4xf32>
      %52 = arith.subf %51, %38 : vector<8x4xf32>
      %53 = arith.mulf %39, %39 : vector<8x4xf32>
      %54 = arith.mulf %45, %45 : vector<8x4xf32>
      %55 = arith.addf %53, %54 : vector<8x4xf32>
      %56 = vector.broadcast %50 : vector<1x4xf32> to vector<8x4xf32>
      %57 = arith.mulf %55, %56 : vector<8x4xf32>
      %58 = arith.addf %52, %57 : vector<8x4xf32>
      %cst_41 = arith.constant 5.000000e-01 : f32
      %59 = vector.broadcast %cst_41 : f32 to vector<8x4xf32>
      %60 = arith.subf %58, %59 : vector<8x4xf32>
      %61 = tpu.iota {dimensions = array<i32: 0>} : vector<8x1xi32>
      %c2_i32 = arith.constant 2 : i32
      %62 = vector.broadcast %c2_i32 : i32 to vector<8x1xi32>
      %63 = arith.cmpi slt, %61, %62 : vector<8x1xi32>
      %64 = arith.extui %63 : vector<8x1xi1> to vector<8x1xi32>
      %65 = arith.sitofp %64 : vector<8x1xi32> to vector<8x1xf32>
      %66 = vector.broadcast %65 : vector<8x1xf32> to vector<8x4xf32>
      %67 = arith.mulf %60, %66 : vector<8x4xf32>
      %68 = vector.shape_cast %67 : vector<8x4xf32> to vector<1x8x4xf32>
      %cst_42 = arith.constant dense<0.000000e+00> : vector<1xf32>
      %69 = vector.multi_reduction <add>, %68, %cst_42 [1, 2] : vector<1x8x4xf32> to vector<1xf32>
      %70 = vector.shape_cast %69 : vector<1xf32> to vector<1x1x1xf32>
      %71 = vector.extract %70[0, 0, 0] : f32 from vector<1x1x1xf32>
      %72 = vector.broadcast %71 : f32 to vector<1x1xf32>
      %cst_43 = arith.constant 5.000000e-01 : f32
      %73 = vector.broadcast %cst_43 : f32 to vector<1x1xf32>
      %74 = arith.mulf %72, %73 : vector<1x1xf32>
      %c0_44 = arith.constant 0 : index
      %c0_45 = arith.constant 0 : index
      %75 = vector.load %arg25[%c0_44, %c0_45] : memref<8x1024xf32, #tpu.memory_space<vmem>>, vector<8x1024xf32>
      %76 = vector.broadcast %65 : vector<8x1xf32> to vector<8x1024xf32>
      %77 = arith.mulf %75, %76 : vector<8x1024xf32>
      %78 = vector.shape_cast %77 : vector<8x1024xf32> to vector<1x8x1024xf32>
      %cst_46 = arith.constant dense<0.000000e+00> : vector<1xf32>
      %79 = vector.multi_reduction <add>, %78, %cst_46 [1, 2] : vector<1x8x1024xf32> to vector<1xf32>
      %80 = vector.shape_cast %79 : vector<1xf32> to vector<1x1x1xf32>
      %81 = vector.extract %80[0, 0, 0] : f32 from vector<1x1x1xf32>
      %82 = vector.broadcast %81 : f32 to vector<1x1xf32>
      %cst_47 = arith.constant 0.000000e+00 : f32
      %83 = vector.broadcast %cst_47 : f32 to vector<1x1xf32>
      %84 = arith.subf %83, %82 : vector<1x1xf32>
      %cst_48 = arith.constant 5.000000e-01 : f32
      %85 = vector.broadcast %cst_48 : f32 to vector<1x1xf32>
      %86 = arith.mulf %84, %85 : vector<1x1xf32>
      %87 = arith.subf %86, %74 : vector<1x1xf32>
      %c0_49 = arith.constant 0 : index
      %c0_50 = arith.constant 0 : index
      %c0_51 = arith.constant 0 : index
      %88 = vector.load %arg21[%c0_49, %c0_50, %c0_51] : memref<2x8x4xf32, #tpu.memory_space<vmem>>, vector<1x8x4xf32>
      %89 = vector.shape_cast %88 : vector<1x8x4xf32> to vector<8x4xf32>
      %90 = vector.shape_cast %42 : vector<8x4xf32> to vector<1x8x4xf32>
      tpu.vector_store %arg21[%c0_49, %c0_50, %c0_51], %90 {strides = array<i32>} : memref<2x8x4xf32, #tpu.memory_space<vmem>>, vector<1x8x4xf32>,
      %c0_52 = arith.constant 0 : index
      %c0_53 = arith.constant 0 : index
      %91 = vector.load %arg27[%c0_52, %c0_53] : memref<8x4xf32, #tpu.memory_space<vmem>>, vector<8x4xf32>
      %c1 = arith.constant 1 : index
      %c0_54 = arith.constant 0 : index
      %c0_55 = arith.constant 0 : index
      %92 = vector.load %arg21[%c1, %c0_54, %c0_55] : memref<2x8x4xf32, #tpu.memory_space<vmem>>, vector<1x8x4xf32>
      %93 = vector.shape_cast %92 : vector<1x8x4xf32> to vector<8x4xf32>
      %94 = vector.shape_cast %91 : vector<8x4xf32> to vector<1x8x4xf32>
      tpu.vector_store %arg21[%c1, %c0_54, %c0_55], %94 {strides = array<i32>} : memref<2x8x4xf32, #tpu.memory_space<vmem>>, vector<1x8x4xf32>,
      %95 = tpu.iota {dimensions = array<i32: 1>} : vector<1x4xi32>
      %c0_i32_56 = arith.constant 0 : i32
      %96 = vector.broadcast %c0_i32_56 : i32 to vector<1x4xi32>
      %97 = arith.cmpi eq, %95, %96 : vector<1x4xi32>
      %c1_i32 = arith.constant 1 : i32
      %98 = vector.broadcast %c1_i32 : i32 to vector<1x4xi32>
      %99 = arith.cmpi eq, %95, %98 : vector<1x4xi32>
      %c2_i32_57 = arith.constant 2 : i32
      %100 = vector.broadcast %c2_i32_57 : i32 to vector<1x4xi32>
      %101 = arith.cmpi eq, %95, %100 : vector<1x4xi32>
      %102 = vector.shape_cast %74 : vector<1x1xf32> to vector<1x1xf32>
      %103 = vector.broadcast %102 : vector<1x1xf32> to vector<1x4xf32>
      %104 = vector.shape_cast %86 : vector<1x1xf32> to vector<1x1xf32>
      %105 = vector.broadcast %104 : vector<1x1xf32> to vector<1x4xf32>
      %106 = arith.select %101, %103, %105 : vector<1x4xi1>, vector<1x4xf32>
      %107 = vector.shape_cast %74 : vector<1x1xf32> to vector<1x1xf32>
      %108 = vector.broadcast %107 : vector<1x1xf32> to vector<1x4xf32>
      %109 = arith.select %99, %108, %106 : vector<1x4xi1>, vector<1x4xf32>
      %110 = vector.shape_cast %87 : vector<1x1xf32> to vector<1x1xf32>
      %111 = vector.broadcast %110 : vector<1x1xf32> to vector<1x4xf32>
      %112 = arith.select %97, %111, %109 : vector<1x4xi1>, vector<1x4xf32>
      %c0_58 = arith.constant 0 : index
      %c0_59 = arith.constant 0 : index
      %113 = vector.load %arg22[%c0_58, %c0_59] : memref<1x4xf32, #tpu.memory_space<vmem>>, vector<1x4xf32>
      tpu.vector_store %arg22[%c0_58, %c0_59], %112 {strides = array<i32>} : memref<1x4xf32, #tpu.memory_space<vmem>>, vector<1x4xf32>,
    } else {
    }
    return
  }
  func.func @transform_0(%arg0: i32) -> i32 {
    %c0_i32 = arith.constant 0 : i32
    %c0_i32_0 = arith.constant 0 : i32
    return %c0_i32 : i32
  }
  func.func @transform_1(%arg0: i32) -> (i32, i32) {
    %c0_i32 = arith.constant 0 : i32
    %c0_i32_0 = arith.constant 0 : i32
    return %c0_i32, %arg0 : i32, i32
  }
  func.func @transform_2(%arg0: i32) -> (i32, i32) {
    %c0_i32 = arith.constant 0 : i32
    %c0_i32_0 = arith.constant 0 : i32
    return %arg0, %c0_i32 : i32, i32
  }
  func.func @transform_3(%arg0: i32) -> (i32, i32) {
    %c0_i32 = arith.constant 0 : i32
    %c0_i32_0 = arith.constant 0 : i32
    return %c0_i32, %arg0 : i32, i32
  }
  func.func @transform_4(%arg0: i32) -> (i32, i32) {
    %c0_i32 = arith.constant 0 : i32
    %c0_i32_0 = arith.constant 0 : i32
    return %c0_i32, %arg0 : i32, i32
  }
  func.func @transform_5(%arg0: i32) -> (i32, i32) {
    %c0_i32 = arith.constant 0 : i32
    %c0_i32_0 = arith.constant 0 : i32
    %c0_i32_1 = arith.constant 0 : i32
    return %c0_i32, %c0_i32_0 : i32, i32
  }
  func.func @transform_6(%arg0: i32) -> (i32, i32) {
    %c0_i32 = arith.constant 0 : i32
    %c0_i32_0 = arith.constant 0 : i32
    %c0_i32_1 = arith.constant 0 : i32
    return %c0_i32, %c0_i32_0 : i32, i32
  }
  func.func @transform_7(%arg0: i32) -> (i32, i32) {
    %c0_i32 = arith.constant 0 : i32
    %c0_i32_0 = arith.constant 0 : i32
    %c0_i32_1 = arith.constant 0 : i32
    return %c0_i32, %c0_i32_0 : i32, i32
  }
  func.func @transform_8(%arg0: i32) -> (i32, i32) {
    %c0_i32 = arith.constant 0 : i32
    %c0_i32_0 = arith.constant 0 : i32
    %c0_i32_1 = arith.constant 0 : i32
    return %c0_i32, %c0_i32_0 : i32, i32
  }
  func.func @transform_9(%arg0: i32) -> (i32, i32) {
    %c0_i32 = arith.constant 0 : i32
    %c0_i32_0 = arith.constant 0 : i32
    %c0_i32_1 = arith.constant 0 : i32
    return %c0_i32, %c0_i32_0 : i32, i32
  }
  func.func @transform_10(%arg0: i32) -> (i32, i32) {
    %c0_i32 = arith.constant 0 : i32
    %c0_i32_0 = arith.constant 0 : i32
    %c0_i32_1 = arith.constant 0 : i32
    return %c0_i32, %c0_i32_0 : i32, i32
  }
  func.func @transform_11(%arg0: i32) -> (i32, i32) {
    %c0_i32 = arith.constant 0 : i32
    %c0_i32_0 = arith.constant 0 : i32
    %c0_i32_1 = arith.constant 0 : i32
    return %c0_i32, %c0_i32_0 : i32, i32
  }
  func.func @transform_12(%arg0: i32) -> (i32, i32) {
    %c0_i32 = arith.constant 0 : i32
    %c0_i32_0 = arith.constant 0 : i32
    %c0_i32_1 = arith.constant 0 : i32
    return %c0_i32, %c0_i32_0 : i32, i32
  }
  func.func @transform_13(%arg0: i32) -> (i32, i32) {
    %c0_i32 = arith.constant 0 : i32
    %c0_i32_0 = arith.constant 0 : i32
    %c0_i32_1 = arith.constant 0 : i32
    return %c0_i32, %c0_i32_0 : i32, i32
  }
  func.func @transform_14(%arg0: i32) -> (i32, i32) {
    %c0_i32 = arith.constant 0 : i32
    %c0_i32_0 = arith.constant 0 : i32
    %c0_i32_1 = arith.constant 0 : i32
    return %c0_i32, %c0_i32_0 : i32, i32
  }
  func.func @transform_15(%arg0: i32) -> (i32, i32) {
    %c0_i32 = arith.constant 0 : i32
    %c0_i32_0 = arith.constant 0 : i32
    %c0_i32_1 = arith.constant 0 : i32
    return %c0_i32, %c0_i32_0 : i32, i32
  }
  func.func @transform_16(%arg0: i32) -> (i32, i32) {
    %c0_i32 = arith.constant 0 : i32
    %c0_i32_0 = arith.constant 0 : i32
    %c0_i32_1 = arith.constant 0 : i32
    return %c0_i32, %c0_i32_0 : i32, i32
  }
  func.func @transform_17(%arg0: i32) -> (i32, i32) {
    %c0_i32 = arith.constant 0 : i32
    %c0_i32_0 = arith.constant 0 : i32
    %c0_i32_1 = arith.constant 0 : i32
    return %c0_i32, %c0_i32_0 : i32, i32
  }
  func.func @transform_18(%arg0: i32) -> (i32, i32) {
    %c0_i32 = arith.constant 0 : i32
    %c0_i32_0 = arith.constant 0 : i32
    %c0_i32_1 = arith.constant 0 : i32
    return %c0_i32, %c0_i32_0 : i32, i32
  }
  func.func @transform_19(%arg0: i32) -> (i32, i32) {
    %c0_i32 = arith.constant 0 : i32
    %c0_i32_0 = arith.constant 0 : i32
    return %c0_i32, %arg0 : i32, i32
  }
  func.func @transform_20(%arg0: i32) -> (i32, i32, i32) {
    %c0_i32 = arith.constant 0 : i32
    %c0_i32_0 = arith.constant 0 : i32
    %c0_i32_1 = arith.constant 0 : i32
    %c0_i32_2 = arith.constant 0 : i32
    return %c0_i32, %c0_i32_0, %c0_i32_1 : i32, i32, i32
  }
  func.func @transform_21(%arg0: i32) -> (i32, i32) {
    %c0_i32 = arith.constant 0 : i32
    %c0_i32_0 = arith.constant 0 : i32
    %c0_i32_1 = arith.constant 0 : i32
    return %c0_i32, %c0_i32_0 : i32, i32
  }
}

</mosaic_0001>

<bundles_post_ra>
// kernel: tpu_custom_call.1
= control target key start
LH: loop header
LB: loop body
LE: loop exit
PB: predicated region body
PF: predicated region fallthrough
CT: control target
= control target key end

     0   :  { %s2388_s0 = inlined_call_operand.<no memory space> [shape: f32[1], index: 0, kind: input, shape index: {}]   ;;  %s2389_s1 = inlined_call_operand.vmem [shape: bf16[8,1024], index: 1, kind: input, shape index: {}]   ;;  %s2390_s2 = inlined_call_operand.vmem [shape: bf16[1024,32], index: 2, kind: input, shape index: {}]   ;;  %s2391_s3 = inlined_call_operand.vmem [shape: bf16[32,1024], index: 3, kind: input, shape index: {}]   ;;  %s2392_s4 = inlined_call_operand.vmem [shape: f32[1,1024], index: 4, kind: input, shape index: {}]   ;;  %s2393_s5 = inlined_call_operand.vmem [shape: f32[8,4], index: 5, kind: input, shape index: {}]   ;;  %s2394_s6 = inlined_call_operand.vmem [shape: f32[8,4], index: 6, kind: input, shape index: {}]   ;;  %s2395_s7 = inlined_call_operand.vmem [shape: f32[8,4], index: 7, kind: input, shape index: {}]   ;;  %s2396_s8 = inlined_call_operand.vmem [shape: f32[8,4], index: 8, kind: input, shape index: {}]   ;;  %s2397_s9 = inlined_call_operand.vmem [shape: f32[8,4], index: 9, kind: input, shape index: {}]   ;;  %s2398_s10 = inlined_call_operand.vmem [shape: f32[1,4], index: 10, kind: input, shape index: {}]   ;;  %s2399_s11 = inlined_call_operand.vmem [shape: f32[1,4], index: 11, kind: input, shape index: {}]   ;;  %s2400_s12 = inlined_call_operand.vmem [shape: f32[1,4], index: 12, kind: input, shape index: {}]   ;;  %s2401_s13 = inlined_call_operand.vmem [shape: f32[1,4], index: 13, kind: input, shape index: {}]   ;;  %s2402_s14 = inlined_call_operand.vmem [shape: f32[1,32], index: 14, kind: input, shape index: {}]   ;;  %s2403_s15 = inlined_call_operand.vmem [shape: bf16[32,256], index: 15, kind: input, shape index: {}]   ;;  %s2404_s16 = inlined_call_operand.vmem [shape: f32[1,256], index: 16, kind: input, shape index: {}]   ;;  %s2405_s17 = inlined_call_operand.vmem [shape: bf16[4,32], index: 17, kind: input, shape index: {}]   ;;  %s2406_s18 = inlined_call_operand.vmem [shape: f32[1,32], index: 18, kind: input, shape index: {}]   ;;  %s2407_s19 = inlined_call_operand.hbm [shape: f32[8,1024], index: 19, kind: output, shape index: {0}]   ;;  %s2408_s20 = inlined_call_operand.vmem [shape: f32[2,8,4], index: 20, kind: output, shape index: {1}]   ;;  %s2409_s21 = inlined_call_operand.hbm [shape: f32[1,4], index: 21, kind: output, shape index: {2}]  }
   0x1   :  { %2413 = sst [smem:[#allocation14_spill]] %s2388_s0 }
   0x2   :  { %2414 = sst [smem:[#allocation15_spill]] %s2389_s1 }
   0x3   :  { %2415 = sst [smem:[#allocation16_spill]] %s2390_s2 }
   0x4   :  { %2416 = sst [smem:[#allocation17_spill]] %s2391_s3 }
   0x5   :  { %2417 = sst [smem:[#allocation18_spill]] %s2392_s4 }
   0x6   :  { %2418 = sst [smem:[#allocation19_spill]] %s2393_s5 }
   0x7   :  { %28 = vsyncpa [#allocation9], 0  ;;  %s2419_s26 = sld [smem:[#allocation16_spill]]  ;;  %vm140_vm0 = vcmask 1041408   ;;  %v132_v6 = vld [vmem:[%s2405_s17] sm:$0x3] }
   0x8   :  { %s2420_s30 = sld [smem:[#allocation14_spill]]  ;;  %v142_v9 = vsel %vm140_vm0, %v132_v6, 0  ;;  %v99_v31 = vld [vmem:[%s2399_s11] sm:$0x1] }
   0x9   :  { %151 = vmatpush.bf16.msra.mxu0 %v142_v9  ;;  %s2423_s3 = sld [smem:[#allocation19_spill]]  ;;  %v75_v33 = vld [vmem:[%s2394_s6] sm:$0xff]  ;;  %v100_v34 = vmul.f32 1.442695, %v99_v31 }
   0xa   :  { %v107_v35 = vld [vmem:[%s2400_s12] sm:$0x1] }
   0xb   :  { %v108_v37 = vmul.f32 1.442695, %v107_v35  ;;  %v122_v38 = vld [vmem:[%s2401_s13] sm:$0x1] }
   0xc   :  { %v123_v45 = vmul.f32 1.442695, %v122_v38  ;;  %v1742_v47 = vld [vmem:[%s2398_s10] ss:$0 sm:$0xff] }
   0xd   :  { %v1658_v0 = vld [vmem:[%s2419_s26 + $0x38] sm:$0xff]  ;;  %v1657_v4 = vld [vmem:[%s2419_s26 + $0x30] sm:$0xff]  ;;  %v1656_v11 = vld [vmem:[%s2419_s26 + $0x28] sm:$0xff] }
   0xe   :  { %v1666_v1 = vld [vmem:[%s2419_s26 + $0x78] sm:$0xff]  ;;  %v1935_v3 = vstv %s2420_s30  ;;  %716 = vmatpush.bf16.msra.mxu1 %v1658_v0  ;;  %v1665_v5 = vld [vmem:[%s2419_s26 + $0x70] sm:$0xff]  ;;  %v1664_v12 = vld [vmem:[%s2419_s26 + $0x68] sm:$0xff]  ;;  %s2424_s30 = sld [smem:[#allocation15_spill]] }
   0xf   :  { %v1674_v2 = vld [vmem:[%s2419_s26 + $0xb8] sm:$0xff]  ;;  %1746 = vrcp.f32 %v1935_v3  ;;  %729 = vmatpush.bf16.msra.mxu2 %v1666_v1  ;;  %v1673_v8 = vld [vmem:[%s2419_s26 + $0xb0] sm:$0xff]  ;;  %v1672_v14 = vld [vmem:[%s2419_s26 + $0xa8] sm:$0xff]  ;;  %vm84_vm1 = vweird.f32 %v1935_v3  ;;  %v90_v20 = vand.u32 2147483648, %v1935_v3  ;;  %v88_v24 = vand.u32 2147483647, %v1935_v3 }
  0x10   :  { %v1682_v7 = vld [vmem:[%s2419_s26 + $0xf8] sm:$0xff]  ;;  %742 = vmatpush.bf16.msra.mxu3 %v1674_v2  ;;  %v1681_v10 = vld [vmem:[%s2419_s26 + $0xf0] sm:$0xff]  ;;  %v1680_v16 = vld [vmem:[%s2419_s26 + $0xe8] sm:$0xff]  ;;  %1748 = vpow2.f32 %v100_v34 }
  0x11   :  { %755 = vmatpush.bf16.msrb.mxu0 %v1682_v7  ;;  %v1655_v17 = vld [vmem:[%s2419_s26 + $0x20] sm:$0xff]  ;;  %v1654_v22 = vld [vmem:[%s2419_s26 + $0x18] sm:$0xff]  ;;  %v91_v30 = vor.u32 1.1754944e-38, %v90_v20  ;;  %vm89_vm4 = vcmp.eq.f32.partialorder %v88_v24, 8.507059e+37  ;;  %v1653_v40 = vld [vmem:[%s2419_s26 + $0x10] sm:$0xff]  ;;  %1750 = vpow2.f32 %v108_v37 }
  0x12   :  { %717 = vmatpush.bf16.msra.mxu1 %v1657_v4  ;;  %v1663_v18 = vld [vmem:[%s2419_s26 + $0x60] sm:$0xff]  ;;  %v1662_v25 = vld [vmem:[%s2419_s26 + $0x58] sm:$0xff]  ;;  %v1661_v41 = vld [vmem:[%s2419_s26 + $0x50] sm:$0xff] }
  0x13   :  { %730 = vmatpush.bf16.msra.mxu2 %v1665_v5  ;;  %v1671_v21 = vld [vmem:[%s2419_s26 + $0xa0] sm:$0xff]  ;;  %v1670_v28 = vld [vmem:[%s2419_s26 + $0x98] sm:$0xff]  ;;  %v1669_v43 = vld [vmem:[%s2419_s26 + $0x90] sm:$0xff] }
  0x14   :  { %743 = vmatpush.bf16.msra.mxu3 %v1673_v8  ;;  %v1679_v26 = vld [vmem:[%s2419_s26 + $0xe0] sm:$0xff]  ;;  %v1678_v39 = vld [vmem:[%s2419_s26 + $0xd8] sm:$0xff]  ;;  %v1652_v46 = vld [vmem:[%s2419_s26 + $0x8] sm:$0xff] }
  0x15   :  { %v1747_v13 = vpop.eup %1746  ;;  %756 = vmatpush.bf16.msrb.mxu0 %v1681_v10  ;;  %v2003_v32 = vld [vmem:[%s2423_s3] sm:$0xff]  ;;  %v1660_v48 = vld [vmem:[%s2419_s26 + $0x48] sm:$0xff]  ;;  %v1677_v49 = vld [vmem:[%s2419_s26 + $0xd0] sm:$0xff] }
  0x16   :  { %v80_v15 = vmul.f32 %v1747_v13, %v1935_v3  ;;  %718 = vmatpush.bf16.msra.mxu1 %v1656_v11  ;;  %vm85_vm2 = vweird.f32 %v1747_v13  ;;  %v77_v42 = vsub.f32 %v2003_v32, %v75_v33  ;;  %v2044_v50 = vld [vmem:[%s2424_s30] sm:$0xff] }
  0x17   :  { %731 = vmatpush.bf16.msra.mxu2 %v1664_v12  ;;  %vm1990_vm3 = vmor %vm84_vm1, %vm85_vm2 }
  0x18   :  { %v81_v19 = vsub.f32 1.0, %v80_v15  ;;  %744 = vmatpush.bf16.msra.mxu3 %v1672_v14 }
  0x19   :  { %757 = vmatpush.bf16.msrb.mxu0 %v1680_v16 }
  0x1a   :  { %v82_v23 = vmul.f32 %v1747_v13, %v81_v19  ;;  %719 = vmatpush.bf16.msra.mxu1 %v1655_v17 }
  0x1b   :  { %732 = vmatpush.bf16.msra.mxu2 %v1663_v18 }
  0x1c   :  { %v83_v29 = vadd.f32 %v1747_v13, %v82_v23  ;;  %745 = vmatpush.bf16.msra.mxu3 %v1671_v21 }
  0x1d   :  { %758 = vmatpush.bf16.msrb.mxu0 %v1679_v26 }
  0x1e   :  { %v87_v36 = vsel %vm1990_vm3, %v1747_v13, %v83_v29  ;;  %720 = vmatpush.bf16.msra.mxu1 %v1654_v22 }
  0x1f   :  { %733 = vmatpush.bf16.msra.mxu2 %v1662_v25  ;;  %v92_v44 = vsel %vm89_vm4, %v91_v30, %v87_v36 }
  0x20   :  { %746 = vmatpush.bf16.msra.mxu3 %v1670_v28  ;;  %v93_v51 = vmul.f32 %v92_v44, %v77_v42 }
  0x21   :  { %759 = vmatpush.bf16.msrb.mxu0 %v1678_v39 }
  0x22   :  { %721 = vmatpush.bf16.msra.mxu1 %v1653_v40 }
  0x23   :  { %734 = vmatpush.bf16.msra.mxu2 %v1661_v41 }
  0x24   :  { %29 = vsyncpa [#allocation11], 0  ;;  %v1749_v52 = vpop.eup %1748  ;;  %747 = vmatpush.bf16.msra.mxu3 %v1669_v43  ;;  %v1668_v53 = vld [vmem:[%s2419_s26 + $0x88] sm:$0xff]  ;;  %1752 = vpow2.f32 %v123_v45  ;;  %v76_v56 = vld [vmem:[%s2395_s7] sm:$0xff]  ;;  %v98_v57 = vmul.f32 %v1742_v47, %v2003_v32  ;;  %v309_v61 = vunpack.c.h.b16 %v2044_v50  ;;  %v308_v2 = vunpack.c.l.b16 %v2044_v50  ;;  %s2425_s27 = sld [smem:[#allocation17_spill]]  ;;  %s1811_s29 = smov [#allocation8]  }
  0x25   :  { %v2052_v54 = vld [vmem:[%s2424_s30 + $0x8] sm:$0xff]  ;;  %v1751_v55 = vpop.eup %1750  ;;  %v103_v58 = vperm.slane %v1749_v52, 0  ;;  %760 = vmatpush.bf16.msrb.mxu0 %v1677_v49  ;;  %v1651_v62 = vld [vmem:[%s2419_s26] sm:$0xff]  ;;  %v1690_v5 = vld [vmem:[%s2419_s26 + $0x138] sm:$0xff]  ;;  %vm119_vm5 = vcmask 31744   ;;  %vm161_vm6 = vcmask 261120  }
  0x26   :  { %v1676_v59 = vld [vmem:[%s2419_s26 + $0xc8] sm:$0xff]  ;;  %v111_v60 = vperm.slane %v1751_v55, 0  ;;  %722 = vmatpush.bf16.msra.mxu1 %v1652_v46  ;;  %v1659_v63 = vld [vmem:[%s2419_s26 + $0x40] sm:$0xff]  ;;  %v310_v1 = vunpack.c.l.b16 %v2052_v54  ;;  %v1698_v7 = vld [vmem:[%s2419_s26 + $0x178] sm:$0xff]  ;;  %v317_v12 = vpack.c.b16 %v309_v61, %v309_v61  ;;  %v316_v15 = vpack.c.b16 %v308_v2, %v308_v2  ;;  %s2426_s24 = sld [smem:[#allocation18_spill]]  ;;  %s1270_s0 = sshll.u32 %s1811_s29, 4  ;;  %s1271_s0 = int_to_ptr.vmem [resolvable:$true] %s1270_s0 }
  0x27   :  { %735 = vmatpush.bf16.msra.mxu2 %v1660_v48  ;;  %v105_v0 = vmul.f32 %v103_v58, %v93_v51  ;;  %v1667_v4 = vld [vmem:[%s2419_s26 + $0x80] sm:$0xff]  ;;  %v1706_v8 = vld [vmem:[%s2419_s26 + $0x1b8] sm:$0xff]  ;;  %v1689_v16 = vld [vmem:[%s2419_s26 + $0x130] sm:$0xff]  ;;  %v311_v45 = vunpack.c.h.b16 %v2052_v54  ;;  %vm159_vm7 = vcmask 257024   ;;  %s1812_s4 = smov [#allocation10]   ;;  %s1285_s10 = sshll.u32 %s2409_s21, 4  ;;  %s1286_s10 = int_to_ptr.hbm [resolvable:$true] %s1285_s10 }
  0x28   :  { %748 = vmatpush.bf16.msra.mxu3 %v1668_v53  ;;  %v113_v6 = vmul.f32 %v111_v60, %v76_v56  ;;  %v1675_v11 = vld [vmem:[%s2419_s26 + $0xc0] sm:$0xff]  ;;  %v318_v14 = vpack.c.b16 %v310_v1, %v310_v1  ;;  %v1697_v17 = vld [vmem:[%s2419_s26 + $0x170] sm:$0xff]  ;;  %v1688_v23 = vld [vmem:[%s2419_s26 + $0x128] sm:$0xff]  ;;  %s1283_s11 = sshll.u32 %s1812_s4, 4  ;;  %vm1263_vm12 = vcmask 24576   ;;  %s1284_s11 = int_to_ptr.vmem [resolvable:$true] %s1283_s11 }
  0x29   :  { %v106_v9 = vsub.f32 %v98_v57, %v105_v0  ;;  %761 = vmatpush.bf16.msrb.mxu0 %v1676_v59  ;;  %v1705_v18 = vld [vmem:[%s2419_s26 + $0x1b0] sm:$0xff]  ;;  %v125_v21 = vld [vmem:[%s2396_s8] sm:$0xff]  ;;  %v1696_v26 = vld [vmem:[%s2419_s26 + $0x168] sm:$0xff]  ;;  %v319_v55 = vpack.c.b16 %v311_v45, %v311_v45  ;;  %s1272_s8 = sshll.u32 %s2407_s19, 4  ;;  %s1273_s8 = int_to_ptr.hbm [resolvable:$true] %s1272_s8 }
  0x2a   :  { %v1753_v10 = vpop.eup %1752  ;;  %723 = vmatpush.bf16.msra.mxu1 %v1651_v62  ;;  %v1704_v27 = vld [vmem:[%s2419_s26 + $0x1a8] sm:$0xff]  ;;  %v1687_v29 = vld [vmem:[%s2419_s26 + $0x120] sm:$0xff]  ;;  %v1714_v31 = vld [vmem:[%s2419_s26 + $0x1f8] sm:$0xff] }
  0x2b   :  { %736 = vmatpush.bf16.msra.mxu2 %v1659_v63  ;;  %v114_v13 = vadd.f32 %v113_v6, %v106_v9  ;;  %v127_v20 = vperm.slane %v1753_v10, 0  ;;  %v1695_v30 = vld [vmem:[%s2419_s26 + $0x160] sm:$0xff]  ;;  %v1686_v35 = vld [vmem:[%s2419_s26 + $0x118] sm:$0xff]  ;;  %v1713_v37 = vld [vmem:[%s2419_s26 + $0x1f0] sm:$0xff] }
  0x2c   :  { %749 = vmatpush.bf16.msra.mxu3 %v1667_v4  ;;  %v1694_v36 = vld [vmem:[%s2419_s26 + $0x158] sm:$0xff]  ;;  %v1685_v39 = vld [vmem:[%s2419_s26 + $0x110] sm:$0xff]  ;;  %v1712_v41 = vld [vmem:[%s2419_s26 + $0x1e8] sm:$0xff] }
  0x2d   :  { %v115_v19 = vmul.f32 %v114_v13, %v1935_v3  ;;  %762 = vmatpush.bf16.msrb.mxu0 %v1675_v11  ;;  %724 = vmatmul.bf16.vlgmr.msra.gmra.mxu1 %v316_v15  ;;  %v129_v25 = vmul.f32 %v127_v20, %v125_v21  ;;  %v1702_v38 = vld [vmem:[%s2419_s26 + $0x198] sm:$0xff]  ;;  %v1693_v40 = vld [vmem:[%s2419_s26 + $0x150] sm:$0xff]  ;;  %v1684_v43 = vld [vmem:[%s2419_s26 + $0x108] sm:$0xff] }
  0x2e   :  { %768 = vmatpush.bf16.msrb.mxu1 %v1690_v5  ;;  %737 = vmatmul.bf16.vlgmr.msra.gmra.mxu2 %v317_v12  ;;  %v1701_v42 = vld [vmem:[%s2419_s26 + $0x190] sm:$0xff]  ;;  %v1692_v46 = vld [vmem:[%s2419_s26 + $0x148] sm:$0xff]  ;;  %v1711_v47 = vld [vmem:[%s2419_s26 + $0x1e0] sm:$0xff] }
  0x2f   :  { %781 = vmatpush.bf16.msrb.mxu2 %v1698_v7  ;;  %v116_v22 = vadd.f32 %v115_v19, %v93_v51  ;;  %750 = vmatmul.bf16.vlgmr.msra.gmra.mxu3 %v318_v14  ;;  %v2158_v44 = vld [vmem:[%s2424_s30 + $0x10] sm:$0xff]  ;;  %v1700_v48 = vld [vmem:[%s2419_s26 + $0x188] sm:$0xff]  ;;  %v2173_v49 = vld [vmem:[%s2424_s30 + $0x18] sm:$0xff] }
  0x30   :  { %794 = vmatpush.bf16.msrb.mxu3 %v1706_v8  ;;  %v312_v51 = vunpack.c.l.b16 %v2158_v44  ;;  %v1683_v52 = vld [vmem:[%s2419_s26 + $0x100] sm:$0xff]  ;;  %v313_v53 = vunpack.c.h.b16 %v2158_v44  ;;  %v314_v57 = vunpack.c.l.b16 %v2173_v49  ;;  %v1710_v58 = vld [vmem:[%s2419_s26 + $0x1d8] sm:$0xff]  ;;  %v1709_v63 = vld [vmem:[%s2419_s26 + $0x1d0] sm:$0xff]  ;;  %v315_v1 = vunpack.c.h.b16 %v2173_v49 }
  0x31   :  { %v117_v24 = vmul.f32 %v116_v22, %v1935_v3  ;;  %120 = vst.msk [vmem:[#allocation6] sm:$0xff] %vm119_vm5, %v116_v22  ;;  %v1691_v56 = vld [vmem:[%s2419_s26 + $0x140] sm:$0xff]  ;;  %v1708_v0 = vld [vmem:[%s2419_s26 + $0x1c8] sm:$0xff] }
  0x32   :  { %769 = vmatpush.bf16.msrb.mxu1 %v1689_v16  ;;  %v1699_v59 = vld [vmem:[%s2419_s26 + $0x180] sm:$0xff]  ;;  %v320_v60 = vpack.c.b16 %v312_v51, %v312_v51  ;;  %v321_v61 = vpack.c.b16 %v313_v53, %v313_v53  ;;  %v322_v62 = vpack.c.b16 %v314_v57, %v314_v57  ;;  %v323_v4 = vpack.c.b16 %v315_v1, %v315_v1  ;;  %v1600_v10 = vld [vmem:[%s2425_s27 + $0x48] sm:$0xf]  ;;  %v1724_v13 = vld [vmem:[%s2425_s27 + $0x4c] sm:$0xf] }
  0x33   :  { %782 = vmatpush.bf16.msrb.mxu2 %v1697_v17  ;;  %v118_v28 = vadd.f32 %v117_v24, %v2003_v32  ;;  %v1703_v32 = vld [vmem:[%s2419_s26 + $0x1a0] sm:$0xff]  ;;  %v1728_v12 = vld [vmem:[%s2425_s27 + $0x64] sm:$0xf0]  ;;  %v1602_v14 = vld [vmem:[%s2425_s27 + $0x68] sm:$0xf0] }
  0x34   :  { %795 = vmatpush.bf16.msrb.mxu3 %v1705_v18  ;;  %v1707_v2 = vld [vmem:[%s2419_s26 + $0x1c0] sm:$0xff]  ;;  %v1601_v15 = vor.u32 %v1728_v12, %v1600_v10  ;;  %v1605_v16 = vor.u32 %v1724_v13, %v1602_v14  ;;  %v1568_v22 = vld [vmem:[%s2425_s27 + $0x8] sm:$0xf]  ;;  %v1718_v53 = vld [vmem:[%s2425_s27 + $0x1c] sm:$0xf] }
  0x35   :  { %121 = vst.msk [vmem:[#allocation5] sm:$0xff] %vm119_vm5, %v118_v28  ;;  %v130_v3 = vadd.f32 %v129_v25, %v118_v28  ;;  %v1723_v5 = vld [vmem:[%s2425_s27 + $0x44] sm:$0xf]  ;;  %v1592_v8 = vld [vmem:[%s2425_s27 + $0x40] sm:$0xf] }
  0x36   :  { %770 = vmatpush.bf16.msrb.mxu1 %v1688_v23  ;;  %v1594_v6 = vld [vmem:[%s2425_s27 + $0x60] sm:$0xf0]  ;;  %v1727_v9 = vld [vmem:[%s2425_s27 + $0x5c] sm:$0xf0]  ;;  %v1720_v23 = vld [vmem:[%s2425_s27 + $0x24] sm:$0xf0] }
  0x37   :  { %783 = vmatpush.bf16.msrb.mxu2 %v1696_v26  ;;  %v131_v33 = vpack.c.bf16 %v130_v3, %v130_v3  ;;  %v1597_v7 = vor.u32 %v1723_v5, %v1594_v6  ;;  %v1593_v11 = vor.u32 %v1727_v9, %v1592_v8  ;;  %v1560_v17 = vld [vmem:[%s2425_s27] sm:$0xf]  ;;  %v1715_v19 = vld [vmem:[%s2425_s27 + $0x4] sm:$0xf]  ;;  %v1569_v25 = vor.u32 %v1720_v23, %v1568_v22  ;;  %v1716_v26 = vld [vmem:[%s2425_s27 + $0xc] sm:$0xf] }
  0x38   :  { %796 = vmatpush.bf16.msrb.mxu3 %v1704_v27  ;;  %v1252_v34 = vld [vmem:[#allocation6] sm:$0xff]  ;;  %v1719_v18 = vld [vmem:[%s2425_s27 + $0x1c] sm:$0xf0]  ;;  %v1562_v21 = vld [vmem:[%s2425_s27 + $0x20] sm:$0xf0] }
  0x39   :  { %1301 = vmatmul.msk.bf16.vlgmr.msra.gmra.mxu0 %vm119_vm5, %v131_v33  ;;  %1650 = vst.msk [vmem:[%s2408_s20 + $0x8] sm:$0xff] %vm119_vm5, %v1252_v34  ;;  %v1561_v20 = vor.u32 %v1719_v18, %v1560_v17  ;;  %v1565_v24 = vor.u32 %v1715_v19, %v1562_v21  ;;  %v1570_v27 = vld [vmem:[%s2425_s27 + $0x28] sm:$0xf0]  ;;  %v1610_v3 = vld [vmem:[%s2425_s27 + $0x70] sm:$0xf0] }
  0x3a   :  { %771 = vmatpush.bf16.msrb.mxu1 %v1687_v29  ;;  %807 = vmatpush.bf16.msra.mxu0 %v1714_v31  ;;  %v1573_v28 = vor.u32 %v1716_v26, %v1570_v27  ;;  %v1725_v29 = vld [vmem:[%s2425_s27 + $0x54] sm:$0xf]  ;;  %v1729_v33 = vld [vmem:[%s2425_s27 + $0x6c] sm:$0xf0]  ;;  %v1616_v34 = vld [vmem:[%s2425_s27 + $0x58] sm:$0xf] }
  0x3b   :  { %784 = vmatpush.bf16.msrb.mxu2 %v1695_v30  ;;  %v1613_v30 = vor.u32 %v1725_v29, %v1610_v3  ;;  %v1733_v6 = vld [vmem:[%s2403_s15 + $0x14] sm:$0xf]  ;;  %v1640_v8 = vld [vmem:[%s2403_s15 + $0x10] sm:$0xf]  ;;  %v1734_v9 = vld [vmem:[%s2403_s15 + $0x14] sm:$0xf0] }
  0x3c   :  { %797 = vmatpush.bf16.msrb.mxu3 %v1703_v32  ;;  %v1608_v32 = vld [vmem:[%s2425_s27 + $0x50] sm:$0xf]  ;;  %v1634_v12 = vld [vmem:[%s2403_s15 + $0x8] sm:$0xf0]  ;;  %v1641_v13 = vor.u32 %v1734_v9, %v1640_v8  ;;  %v1732_v17 = vld [vmem:[%s2403_s15 + $0x4] sm:$0xf0] }
  0x3e   :  { %772 = vmatpush.bf16.msrb.mxu1 %v1686_v35  ;;  %808 = vmatpush.bf16.msra.mxu0 %v1713_v37  ;;  %v1609_v35 = vor.u32 %v1729_v33, %v1608_v32  ;;  %v1726_v37 = vld [vmem:[%s2425_s27 + $0x5c] sm:$0xf] }
  0x3f   :  { %785 = vmatpush.bf16.msrb.mxu2 %v1694_v36  ;;  %v1730_v36 = vld [vmem:[%s2425_s27 + $0x74] sm:$0xf0] }
  0x40   :  { %798 = vmatpush.bf16.msrb.mxu3 %v1702_v38  ;;  %v1618_v38 = vld [vmem:[%s2425_s27 + $0x78] sm:$0xf0] }
  0x42   :  { %773 = vmatpush.bf16.msrb.mxu1 %v1685_v39  ;;  %809 = vmatpush.bf16.msra.mxu0 %v1712_v41  ;;  %v1617_v39 = vor.u32 %v1730_v36, %v1616_v34  ;;  %v1576_v41 = vld [vmem:[%s2425_s27 + $0x10] sm:$0xf] }
  0x43   :  { %786 = vmatpush.bf16.msrb.mxu2 %v1693_v40  ;;  %v1621_v40 = vor.u32 %v1726_v37, %v1618_v38  ;;  %v1744_v37 = vld [vmem:[%s2402_s14] ss:$0 sm:$0xff] }
  0x44   :  { %799 = vmatpush.bf16.msrb.mxu3 %v1701_v42  ;;  %v1721_v42 = vld [vmem:[%s2425_s27 + $0x2c] sm:$0xf0] }
  0x45   :  { %v1577_v45 = vor.u32 %v1721_v42, %v1576_v41  ;;  %v840_v42 = vld [vmem:[%s2426_s24] sm:$0xff] }
  0x46   :  { %774 = vmatpush.bf16.msrb.mxu1 %v1684_v43  ;;  %810 = vmatpush.bf16.msra.mxu0 %v1711_v47  ;;  %v1717_v43 = vld [vmem:[%s2425_s27 + $0x14] sm:$0xf]  ;;  %v1584_v47 = vld [vmem:[%s2425_s27 + $0x18] sm:$0xf]  ;;  %v848_v8 = vperm.slane %v840_v42, 6 }
  0x47   :  { %787 = vmatpush.bf16.msrb.mxu2 %v1692_v46  ;;  %v1578_v46 = vld [vmem:[%s2425_s27 + $0x30] sm:$0xf0] }
  0x48   :  { %800 = vmatpush.bf16.msrb.mxu3 %v1700_v48  ;;  %v1722_v48 = vld [vmem:[%s2425_s27 + $0x34] sm:$0xf0]  ;;  %v1581_v51 = vor.u32 %v1717_v43, %v1578_v46  ;;  %v842_v43 = vperm.slane %v840_v42, 0 }
  0x49   :  { %763 = vmatmul.bf16.vlgmr.msrb.gmra.mxu0 %v319_v55  ;;  %v1586_v55 = vld [vmem:[%s2425_s27 + $0x38] sm:$0xf0] }
  0x4a   :  { %775 = vmatpush.bf16.msrb.mxu1 %v1683_v52  ;;  %811 = vmatpush.bf16.msra.mxu0 %v1710_v58  ;;  %v1585_v52 = vor.u32 %v1722_v48, %v1584_v47  ;;  %v1589_v57 = vor.u32 %v1718_v53, %v1586_v55  ;;  %v844_v53 = vperm.slane %v840_v42, 2 }
  0x4b   :  { %788 = vmatpush.bf16.msrb.mxu2 %v1691_v56 }
  0x4c   :  { %801 = vmatpush.bf16.msrb.mxu3 %v1699_v59  ;;  %v1743_v59 = vld [vmem:[%s2406_s18] ss:$0 sm:$0xff] }
  0x4d   :  { %776 = vmatmul.bf16.vlgmr.msrb.gmra.mxu1 %v320_v60 }
  0x4e   :  { %789 = vmatmul.bf16.vlgmr.msrb.gmra.mxu2 %v321_v61  ;;  %812 = vmatpush.bf16.msra.mxu0 %v1709_v63  ;;  %v1810_v61 = vmov 0.0  }
  0x4f   :  { %802 = vmatmul.bf16.vlgmr.msrb.gmra.mxu3 %v322_v62  ;;  %960 = vmatpush.bf16.msra.mxu2 %v1597_v7  ;;  %162 = vst.msk [vmem:[#allocation2] sm:$0xff] %vm161_vm6, %v1810_v61  ;;  %v1642_v7 = vld [vmem:[%s2403_s15 + $0x18] sm:$0xf0] }
  0x50   :  { %947 = vmatpush.bf16.msra.mxu1 %v1593_v11  ;;  %973 = vmatpush.bf16.msra.mxu3 %v1601_v15  ;;  %v1645_v10 = vor.u32 %v1733_v6, %v1642_v7  ;;  %v1731_v11 = vld [vmem:[%s2403_s15 + $0x4] sm:$0xf]  ;;  %v847_v7 = vperm.slane %v840_v42, 5 }
  0x51   :  { %v1637_v19 = vor.u32 %v1731_v11, %v1634_v12 }
  0x52   :  { %813 = vmatpush.bf16.msra.mxu0 %v1708_v0 }
  0x53   :  { %961 = vmatpush.bf16.msra.mxu2 %v1565_v24 }
  0x54   :  { %948 = vmatpush.bf16.msra.mxu1 %v1561_v20  ;;  %974 = vmatpush.bf16.msra.mxu3 %v1569_v25 }
  0x56   :  { %814 = vmatpush.bf16.msra.mxu0 %v1707_v2 }
  0x57   :  { %1012 = vmatpush.bf16.msrb.mxu2 %v1613_v30  ;;  %v175_v30 = vld [vmem:[#allocation2] sm:$0xff] }
  0x58   :  { %999 = vmatpush.bf16.msrb.mxu1 %v1609_v35  ;;  %1025 = vmatpush.bf16.msrb.mxu3 %v1617_v39 }
  0x59   :  { %815 = vmatmul.bf16.vlgmr.msra.gmra.mxu0 %v323_v4 }
  0x5a   :  { %986 = vmatpush.bf16.msrb.mxu0 %v1605_v16  ;;  %v1632_v16 = vld [vmem:[%s2403_s15] sm:$0xf] }
  0x5b   :  { %1013 = vmatpush.bf16.msrb.mxu2 %v1581_v51  ;;  %v1633_v20 = vor.u32 %v1732_v17, %v1632_v16  ;;  %v1176_v16 = vld [vmem:[%s2401_s13] sm:$0x1] }
  0x5c   :  { %1000 = vmatpush.bf16.msrb.mxu1 %v1577_v45  ;;  %1026 = vmatpush.bf16.msrb.mxu3 %v1585_v52  ;;  %v845_v45 = vperm.slane %v840_v42, 3  ;;  %v843_v52 = vperm.slane %v840_v42, 1 }
  0x5e   :  { %987 = vmatpush.bf16.msrb.mxu0 %v1573_v28 }
  0x62   :  { %1038 = vmatpush.bf16.msra.mxu0 %v1621_v40 }
  0x66   :  { %1039 = vmatpush.bf16.msra.mxu0 %v1589_v57 }
  0xaa   :  { %v725_v31 = vpop.f32.mrf.mxu1 }
  0xb1   :  { %v738_v56 = vpop.f32.mrf.mxu2 }
  0xb2   :  { %v751_v58 = vpop.f32.mrf.mxu3  ;;  %v727_v60 = vpop.f32.mrf.mxu1  ;;  %v739_v14 = vadd.f32 %v738_v56, %v725_v31 }
  0xb4   :  { %v752_v21 = vadd.f32 %v751_v58, %v739_v14 }
  0xb6   :  { %v153_v62 = vpop.f32.mrf.mxu0 }
  0xb7   :  { %v154_v63 = vadd.f32 %v1743_v59, %v153_v62  ;;  %v846_v62 = vperm.slane %v840_v42, 4 }
  0xb9   :  { %v157_v0 = vmax.f32 %v154_v63, 0.0  ;;  %v740_v1 = vpop.f32.mrf.mxu2 }
  0xba   :  { %v753_v2 = vpop.f32.mrf.mxu3 }
  0xbb   :  { %v158_v4 = vpack.c.bf16 %v157_v0, %v157_v0  ;;  %v849_v0 = vperm.slane %v840_v42, 7 }
  0xbd   :  { %160 = vst.msk [vmem:[#allocation3] sm:$0xf] %vm159_vm7, %v158_v4 }
  0xbe   :  { %v155_v5 = vpop.f32.mrf.mxu0 }
  0xc4   :  { %v823_v15 = vld [vmem:[#allocation3] sm:$0xf] }
  0xc5   :  { %1622 = vmatmul.msk.bf16.vlgmr.msra.gmra.mxu1 %vm161_vm6, %v823_v15  ;;  %1623 = vmatmul.msk.bf16.vlgmr.msra.gmra.mxu2 %vm161_vm6, %v823_v15 }
  0xc6   :  { %1624 = vmatmul.msk.bf16.vlgmr.msra.gmra.mxu3 %vm161_vm6, %v823_v15  ;;  %1625 = vmatmul.msk.bf16.vlgmr.msrb.gmra.mxu0 %vm161_vm6, %v823_v15  ;;  %v764_v18 = vpop.f32.mrf.mxu0 }
  0xc7   :  { %1164 = vmatpush.bf16.msra.mxu2 %v1645_v10  ;;  %1151 = vmatpush.bf16.msra.mxu1 %v1641_v13  ;;  %v765_v23 = vadd.f32 %v764_v18, %v752_v21  ;;  %v1179_v18 = vmul.f32 -2.0, %v1176_v16  ;;  %v1054_v21 = vunpack.c.h.bf16 %v2044_v50 }
  0xca   :  { %v777_v22 = vpop.f32.mrf.mxu1 }
  0xcb   :  { %1165 = vmatpush.bf16.msra.mxu2 %v1637_v19  ;;  %1152 = vmatpush.bf16.msra.mxu1 %v1633_v20  ;;  %v778_v25 = vadd.f32 %v777_v22, %v765_v23  ;;  %v1196_v20 = vlaneseq  ;;  %v1180_v22 = vmul.f32 1.442695, %v1179_v18  ;;  %v1116_v23 = vld [vmem:[%s2404_s16] sm:$0x3] }
  0xcd   :  { %1754 = vpow2.f32 %v1180_v22 }
  0xce   :  { %v766_v24 = vpop.f32.mrf.mxu0 }
  0xcf   :  { %v1053_v24 = vunpack.c.l.bf16 %v2044_v50  ;;  %v1056_v50 = vunpack.c.h.bf16 %v2052_v54 }
  0xd1   :  { %v790_v26 = vpop.f32.mrf.mxu2 }
  0xd2   :  { %v791_v27 = vadd.f32 %v790_v26, %v778_v25  ;;  %v803_v28 = vpop.f32.mrf.mxu3  ;;  %v779_v29 = vpop.f32.mrf.mxu1  ;;  %v1119_v25 = vperm.slane %v1116_v23, 1  ;;  %v1197_v26 = vshrl.u32 %v1196_v20, 7 }
  0xd3   :  { %v1118_v29 = vperm.slane %v1116_v23, 0 }
  0xd4   :  { %v804_v3 = vadd.f32 %v803_v28, %v791_v27  ;;  %v1055_v28 = vunpack.c.l.bf16 %v2052_v54  ;;  %vm1198_vm8 = vcmp.lt.s32.totalorder %v1197_v26, 2  ;;  %v1173_v54 = vld [vmem:[%s2397_s9] sm:$0xff] }
  0xd5   :  { %1626 = vmatmul.msk.bf16.vlgmr.msrb.gmra.mxu1 %vm161_vm6, %v823_v15  ;;  %1627 = vmatmul.msk.bf16.vlgmr.msrb.gmra.mxu2 %vm161_vm6, %v823_v15 }
  0xd6   :  { %1628 = vmatmul.msk.bf16.vlgmr.msrb.gmra.mxu3 %vm161_vm6, %v823_v15  ;;  %1629 = vmatmul.msk.bf16.vlgmr.msra.gmra.mxu0 %vm161_vm6, %v823_v15  ;;  %v816_v31 = vpop.f32.mrf.mxu0 }
  0xd7   :  { %v817_v32 = vadd.f32 %v816_v31, %v804_v3 }
  0xd9   :  { %v792_v33 = vpop.f32.mrf.mxu2  ;;  %v820_v35 = vadd.f32 %v817_v32, %v175_v30 }
  0xda   :  { %v805_v34 = vpop.f32.mrf.mxu3 }
  0xdb   :  { %822 = vst.msk [vmem:[#allocation2] sm:$0xff] %vm161_vm6, %v820_v35 }
  0xde   :  { %v818_v36 = vpop.f32.mrf.mxu0 }
  0xe2   :  { %v1104_v38 = vld [vmem:[#allocation2] sm:$0xff] }
  0xe3   :  { %v1109_v39 = vadd.f32 %v1744_v37, %v1104_v38  ;;  %v1755_v37 = vpop.eup %1754 }
  0xe5   :  { %v1110_v40 = vmax.f32 %v1109_v39, 0.0  ;;  %v1057_v39 = vunpack.c.l.bf16 %v2158_v44 }
  0xe7   :  { %v1111_v41 = vpack.c.bf16 %v1110_v40, %v1110_v40  ;;  %v1177_v40 = vld [vmem:[#allocation5] sm:$0xff] }
  0xe9   :  { %1646 = vmatmul.msk.bf16.vlgmr.msra.gmra.mxu1 %vm161_vm6, %v1111_v41  ;;  %1647 = vmatmul.msk.bf16.vlgmr.msra.gmra.mxu2 %vm161_vm6, %v1111_v41  ;;  %v1649_v41 = vsel %vm1198_vm8, 1.0, %v1810_v61 }
 0x142   :  { %v950_v46 = vpop.f32.mrf.mxu1 }
 0x143   :  { %v951_v47 = vadd.f32 %v950_v46, %v842_v43  ;;  %v989_v48 = vpop.f32.mrf.mxu0 }
 0x144   :  { %v2342_v51 = vadd.f32 %v989_v48, %v845_v45  ;;  %v1058_v45 = vunpack.c.h.bf16 %v2158_v44  ;;  %v1182_v48 = vmul.f32 0.5, %v1755_v37  ;;  %v1745_v44 = vld [vmem:[%s2401_s13] ss:$0 sm:$0xff] }
 0x145   :  { %1045 = vst [vmem:[#allocation8] sm:$0xff] %v951_v47  ;;  %v1061_v30 = vsub.f32 %v951_v47, %v1053_v24 }
 0x146   :  { %1048 = vst [vmem:[#allocation8 + $0x18] sm:$0xff] %v2342_v51 }
 0x147   :  { %v1077_v38 = vmul.f32 %v1061_v30, %v1061_v30 }
 0x148   :  { %v963_v55 = vpop.f32.mrf.mxu2 }
 0x149   :  { %v964_v56 = vadd.f32 %v963_v55, %v843_v52  ;;  %v976_v57 = vpop.f32.mrf.mxu3  ;;  %v1223_v52 = vmul.f32 %v1649_v41, %v1077_v38 }
 0x14a   :  { %v977_v58 = vadd.f32 %v976_v57, %v844_v53  ;;  %v952_v59 = vpop.f32.mrf.mxu1  ;;  %v1064_v53 = vsub.f32 %v2342_v51, %v1056_v50  ;;  %v1059_v51 = vunpack.c.l.bf16 %v2173_v49 }
 0x14b   :  { %1046 = vst [vmem:[#allocation8 + $0x8] sm:$0xff] %v964_v56  ;;  %v991_v60 = vpop.f32.mrf.mxu0  ;;  %v1062_v27 = vsub.f32 %v964_v56, %v1054_v21 }
 0x14c   :  { %1047 = vst [vmem:[#allocation8 + $0x10] sm:$0xff] %v977_v58  ;;  %v1063_v34 = vsub.f32 %v977_v58, %v1055_v28 }
 0x14d   :  { %v1078_v33 = vmul.f32 %v1062_v27, %v1062_v27 }
 0x14e   :  { %v1079_v43 = vmul.f32 %v1063_v34, %v1063_v34 }
 0x14f   :  { %v1224_v42 = vmul.f32 %v1649_v41, %v1078_v33 }
 0x150   :  { %v965_v63 = vpop.f32.mrf.mxu2  ;;  %v1225_v58 = vmul.f32 %v1649_v41, %v1079_v43 }
 0x151   :  { %v978_v1 = vpop.f32.mrf.mxu3  ;;  %v1231_v57 = vadd.f32 %v1224_v42, %v1223_v52  ;;  %v1191_v63 = vperm.slane %v1182_v48, 0 }
 0x152   :  { %v1002_v2 = vpop.f32.mrf.mxu1 }
 0x153   :  { %v1003_v4 = vadd.f32 %v1002_v2, %v846_v62  ;;  %v1041_v5 = vpop.f32.mrf.mxu0 }
 0x154   :  { %v2345_v6 = vadd.f32 %v1041_v5, %v849_v0  ;;  %v1080_v0 = vmul.f32 %v1064_v53, %v1064_v53  ;;  %v1232_v5 = vadd.f32 %v1231_v57, %v1225_v58 }
 0x155   :  { %1049 = vst [vmem:[#allocation8 + $0x20] sm:$0xff] %v1003_v4  ;;  %v1065_v55 = vsub.f32 %v1003_v4, %v1057_v39 }
 0x156   :  { %1052 = vst [vmem:[#allocation8 + $0x38] sm:$0xff] %v2345_v6 }
 0x157   :  { %v1081_v1 = vmul.f32 %v1065_v55, %v1065_v55 }
 0x158   :  { %v1015_v9 = vpop.f32.mrf.mxu2 }
 0x159   :  { %v1016_v10 = vadd.f32 %v1015_v9, %v847_v7  ;;  %v1028_v11 = vpop.f32.mrf.mxu3 }
 0x15a   :  { %v2348_v12 = vadd.f32 %v1028_v11, %v848_v8  ;;  %v1004_v13 = vpop.f32.mrf.mxu1  ;;  %v1227_v11 = vmul.f32 %v1649_v41, %v1081_v1 }
 0x15b   :  { %1050 = vst [vmem:[#allocation8 + $0x28] sm:$0xff] %v1016_v10  ;;  %v1043_v14 = vpop.f32.mrf.mxu0  ;;  %v1066_v59 = vsub.f32 %v1016_v10, %v1058_v45  ;;  %v1226_v10 = vmul.f32 %v1649_v41, %v1080_v0  ;;  %v1060_v13 = vunpack.c.h.bf16 %v2173_v49 }
 0x15c   :  { %1051 = vst [vmem:[#allocation8 + $0x30] sm:$0xff] %v2348_v12  ;;  %v1067_v14 = vsub.f32 %v2348_v12, %v1059_v51 }
 0x15d   :  { %v1082_v7 = vmul.f32 %v1066_v59, %v1066_v59  ;;  %v1233_v16 = vadd.f32 %v1232_v5, %v1226_v10  ;;  %v1068_v21 = vsub.f32 %v2345_v6, %v1060_v13  ;;  %1275 = dma.vmem_to_hbm [thread:$0]  %s1271_s0, 1024, %s1273_s8, [#allocation9]  }
 0x15e   :  { %v1083_v22 = vmul.f32 %v1067_v14, %v1067_v14 }
 0x15f   :  { %v1084_v26 = vmul.f32 %v1068_v21, %v1068_v21 }
 0x160   :  { %v1017_v15 = vpop.f32.mrf.mxu2  ;;  %v1229_v27 = vmul.f32 %v1649_v41, %v1083_v22 }
 0x161   :  { %v1030_v17 = vpop.f32.mrf.mxu3 }
 0x162   :  { %v1228_v17 = vmul.f32 %v1649_v41, %v1082_v7 }
 0x166   :  { %v1154_v19 = vpop.f32.mrf.mxu1 }
 0x167   :  { %v1155_v36 = vadd.f32 %v1154_v19, %v1118_v29  ;;  %v1234_v19 = vadd.f32 %v1233_v16, %v1227_v11  ;;  %v1230_v29 = vmul.f32 %v1649_v41, %v1084_v26 }
 0x169   :  { %v1178_v46 = vsub.f32 %v1155_v36, %v1177_v40  ;;  %v1235_v24 = vadd.f32 %v1234_v19, %v1228_v17  ;;  %v1256_v40 = vand.u32 127, %v1196_v20 }
 0x16b   :  { %v1188_v61 = vmul.f32 %v1178_v46, %v1178_v46  ;;  %v1236_v28 = vadd.f32 %v1235_v24, %v1229_v27  ;;  %vm1259_vm9 = vcmp.eq.s32.totalorder %v1256_v40, 2  ;;  %vm1258_vm10 = vcmp.eq.s32.totalorder %v1256_v40, 1 }
 0x16c   :  { %v1167_v3 = vpop.f32.mrf.mxu2  ;;  %vm1257_vm11 = vcmp.eq.s32.totalorder %v1256_v40, 0 }
 0x16d   :  { %v1168_v31 = vadd.f32 %v1167_v3, %v1119_v25  ;;  %v1237_v49 = vadd.f32 %v1236_v28, %v1230_v29 }
 0x16e   :  { %v1156_v32 = vpop.f32.mrf.mxu1 }
 0x16f   :  { %v1171_v35 = vmul.f32 1.442695, %v1168_v31  ;;  %v1186_v8 = vsub.f32 %v1745_v44, %v1168_v31 }
 0x171   :  { %1756 = vpow2.f32 %v1171_v35 }
 0x174   :  { %v1169_v47 = vpop.f32.mrf.mxu2 }
 0x177   :  { %v1757_v56 = vpop.eup %1756 }
 0x178   :  { %v1174_v60 = vmul.f32 %v1757_v56, %v1173_v54  ;;  %v1187_v62 = vmul.f32 %v1757_v56, %v1757_v56 }
 0x17a   :  { %v1175_v2 = vadd.f32 %v1174_v60, %v1155_v36  ;;  %v1189_v4 = vadd.f32 %v1188_v61, %v1187_v62 }
 0x17c   :  { %1251 = vst.msk [vmem:[%s2408_s20] sm:$0xff] %vm119_vm5, %v1175_v2  ;;  %v1193_v9 = vmul.f32 %v1191_v63, %v1189_v4 }
 0x17e   :  { %v1194_v15 = vadd.f32 %v1193_v9, %v1186_v8 }
 0x180   :  { %v1648_v18 = vadd.f32 -0.5, %v1194_v15 }
 0x182   :  { %v1201_v23 = vmul.f32 %v1649_v41, %v1648_v18 }
 0x184   :  { %v1203_v25 = vsel %vm119_vm5, %v1201_v23, 0.0 }
 0x185   :  { %1204 = vadd.xlane.f32.xlu0 %v1203_v25 }
 0x18d   :  { %1238 = vadd.xlane.f32.xlu0 %v1237_v49 }
 0x1f8   :  { %v1205_v6 = vpop.xlane.xlu0 %1204 }
 0x1f9   :  { %v1206_v12 = vrot.slane %v1205_v6, 4 }
 0x1fb   :  { %v1207_v3 = vadd.f32 %v1206_v12, %v1205_v6 }
 0x1fd   :  { %v1208_v30 = vrot.slane %v1207_v3, 2 }
 0x1ff   :  { %v1209_v31 = vadd.f32 %v1208_v30, %v1207_v3 }
 0x200   :  { %v1239_v32 = vpop.xlane.xlu0 %1238 }
 0x201   :  { %v1240_v33 = vrot.slane %v1239_v32, 4  ;;  %v1210_v34 = vrot.slane %v1209_v31, 1 }
 0x203   :  { %v1241_v35 = vadd.f32 %v1240_v33, %v1239_v32  ;;  %v1211_v36 = vadd.f32 %v1210_v34, %v1209_v31 }
 0x205   :  { %v1242_v37 = vrot.slane %v1241_v35, 2  ;;  %1735 = vpush %v1211_v36 }
 0x207   :  { %v1243_v38 = vadd.f32 %v1242_v37, %v1241_v35 }
 0x209   :  { %v1244_v50 = vrot.slane %v1243_v38, 1 }
 0x20b   :  { %v1245_v39 = vadd.f32 %v1244_v50, %v1243_v38 }
 0x20d   :  { %1737 = vpush %v1245_v39 }
 0x236   :  { %s1736_s19 = spop %1735 }
 0x237   :  { %v1213_v41 = vstv %s1736_s19 }
 0x238   :  { %v1214_v45 = vmul.f32 0.5, %v1213_v41 }
 0x23e   :  { %s1738_s26 = spop %1737 }
 0x23f   :  { %v1247_v42 = vstv %s1738_s26 }
 0x240   :  { %v1248_v43 = vsub.f32 0.0, %v1247_v42 }
 0x242   :  { %v1249_v46 = vmul.f32 0.5, %v1248_v43 }
 0x244   :  { %v1250_v47 = vsub.f32 %v1249_v46, %v1214_v45  ;;  %v1260_v48 = vsel %vm1259_vm9, %v1214_v45, %v1249_v46 }
 0x245   :  { %v1261_v52 = vsel %vm1258_vm10, %v1214_v45, %v1260_v48 }
 0x246   :  { %v1262_v20 = vsel %vm1257_vm11, %v1250_v47, %v1261_v52 }
 0x247   :  { %1264 = vst.msk [vmem:[#allocation10] sm:$0x1] %vm1263_vm12, %v1262_v20 }
 0x248   :  { %1288 = dma.vmem_to_hbm [thread:$0]  %s1284_s11, 16, %s1286_s10, [#allocation11]  }
 0x249   :  { %1806 = dma.done.wait [#allocation9], 1024  }
 0x24a   :  { %1807 = vsyncadd [#allocation9], 4294966272 }
 0x24b   :  { %1808 = dma.done.wait [#allocation11], 16  }
 0x24c   :  { %1809 = vsyncadd [#allocation11], 4294967280 }
 0x24d   :  { %1299 = vsyncpa [#allocation9], 1 }
 0x24e   :  { %1300 = vsyncpa [#allocation11], 1 }

</bundles_post_ra>
